<compile_context>
chip_gen: v7x
topology: tpu7x:2x2x1
jax: 0.10.0
libtpu: 0.0.40
codegen_flags: <defaults>
</compile_context>

<pallas_src>
import functools
import math

import jax
import jax.numpy as jnp
from jax.experimental import pallas as pl
from jax.experimental.pallas import tpu as pltpu


def _layer_norm(v, gamma, beta, eps=1e-5):
    mu = jnp.mean(v, axis=-1, keepdims=True)
    var = jnp.mean((v - mu) ** 2, axis=-1, keepdims=True)
    return (v - mu) * jax.lax.rsqrt(var + eps) * gamma + beta


# ----------------------------------------------------------------------------
# Pass 1: norm1 + Q/K/V projections (full-width bf16 matmuls, f32 accumulate).
# Results are written head-major (B, H, S, d_k); 1/sqrt(d_k) folded into Q.
# ----------------------------------------------------------------------------
def _qkv_proj_kernel(x_ref, ln1_g_ref, ln1_b_ref,
                     wq_ref, bq_ref, wk_ref, bk_ref, wv_ref, bv_ref,
                     q_out_ref, k_out_ref, v_out_ref, *, num_heads, scale):
    x = x_ref[0]                                              # (TS, D) f32
    x_ = _layer_norm(x, ln1_g_ref[...], ln1_b_ref[...])       # f32
    x_b = x_.astype(jnp.bfloat16)
    q = (jnp.dot(x_b, wq_ref[...], preferred_element_type=jnp.float32)
         + bq_ref[...]) * scale                               # scale folded into Q
    k = jnp.dot(x_b, wk_ref[...], preferred_element_type=jnp.float32) + bk_ref[...]
    v = jnp.dot(x_b, wv_ref[...], preferred_element_type=jnp.float32) + bv_ref[...]
    qb = q.astype(q_out_ref.dtype)
    kb = k.astype(k_out_ref.dtype)
    vb = v.astype(v_out_ref.dtype)

    d_k = q.shape[-1] // num_heads
    # Static unroll over heads: cheap lane-slice relayouts hidden under the
    # three D x D matmuls; avoids the XLA transpose + HBM round trip.
    for h in range(num_heads):
        sl = slice(h * d_k, (h + 1) * d_k)
        q_out_ref[0, h] = qb[:, sl]
        k_out_ref[0, h] = kb[:, sl]
        v_out_ref[0, h] = vb[:, sl]


# ----------------------------------------------------------------------------
# Pass 2: head-batched attention + output projection + norm2 + FFN + residuals
# ----------------------------------------------------------------------------
def _attn_ffn_kernel(x_ref, q_ref, k_ref, v_ref, bias_ref,
                     wo_h_ref, bo_ref,
                     ln2_g_ref, ln2_b_ref,
                     fc1_w_ref, fc1_b_ref, fc2_w_ref, fc2_b_ref,
                     out_ref, *, num_heads):
    x = x_ref[0]                  # (TQ, D)    f32   (residual path stays f32)
    qh = q_ref[0]                 # (H, TQ, dk) bf16  (pre-scaled by 1/sqrt(dk))
    kh = k_ref[0]                 # (H, S,  dk) bf16
    vh = v_ref[0]                 # (H, S,  dk) bf16
    bias = bias_ref[...].astype(jnp.float32)   # (TQ, S) additive mask (0 / -1e30)

    # ---- scaled dot-product attention, head-batched on the MXU ----
    scores = jnp.einsum('hqd,hkd->hqk', qh, kh,
                        preferred_element_type=jnp.float32)
    scores = scores + bias[None, :, :]

    m = jnp.max(scores, axis=-1, keepdims=True)               # f32 softmax
    p = jnp.exp(scores - m)
    l = jnp.sum(p, axis=-1, keepdims=True)
    probs = (p * pl.reciprocal(l, approx=True)).astype(jnp.bfloat16)  # EUP recip

    attn = jnp.einsum('hqk,hkd->hqd', probs, vh,
                      preferred_element_type=jnp.float32)     # (H, TQ, dk)
    attn_b = attn.astype(jnp.bfloat16)

    # ---- combine_heads fused with W_o: per-head accumulate into one (TQ, D)
    #      f32 accumulator (no (H,TQ,D) intermediate, no cross-head reduction).
    acc = jnp.dot(attn_b[0], wo_h_ref[0], preferred_element_type=jnp.float32)
    for h in range(1, num_heads):
        acc = acc + jnp.dot(attn_b[h], wo_h_ref[h],
                            preferred_element_type=jnp.float32)
    attn_out = acc + bo_ref[...]                              # (TQ, D) f32

    # ---- residual 1 (dropout = identity) ----
    x_o = x + attn_out

    # ---- norm2 + feed forward ----
    x_f = _layer_norm(x_o, ln2_g_ref[...], ln2_b_ref[...])
    h1 = jnp.dot(x_f.astype(jnp.bfloat16), fc1_w_ref[...],
                 preferred_element_type=jnp.float32) + fc1_b_ref[...]
    h1 = jnp.maximum(h1, 0.0)                                  # ReLU
    ff = jnp.dot(h1.astype(jnp.bfloat16), fc2_w_ref[...],
                 preferred_element_type=jnp.float32) + fc2_b_ref[...]

    # ---- residual 2 (dropout = identity) ----
    out_ref[0] = (x_o + ff).astype(out_ref.dtype)


# ----------------------------------------------------------------------------
# Wrapper
# ----------------------------------------------------------------------------
def _vmem_limit_bytes():
    """Generation-aware scoped-VMEM budget with headroom."""
    try:
        cap = int(pltpu.get_tpu_info().vmem_capacity_bytes)
        # ~85% of physical, capped at 100 MiB (v5e/v6e); ~54 MiB on v7x (64 MiB).
        return max(32 << 20, min(int(cap * 0.85), 100 << 20))
    except Exception:
        return 48 << 20   # safe on every generation (v7x has only 64 MiB / core)


def _pick_tile(S, ok=None):
    divisors = [t for t in (512, 256, 128, 64, 32, 16, 8) if S % t == 0]
    if not divisors:
        return S
    if ok is not None:
        for t in divisors:
            if ok(t):
                return t
        return divisors[-1]      # best effort under a tight budget
    return divisors[0]


def _decoder_layer_impl(x, tgt_mask, params, *, num_heads, seq_tile,
                        single_buffer_consts):
    B, S, D = x.shape
    H = num_heads
    d_k = D // H
    F = params['fc1_w'].shape[1]
    bf16 = jnp.bfloat16

    vmem_limit = _vmem_limit_bytes()

    # pass-1 sequence tile: biggest tile dividing S
    TS = seq_tile if seq_tile is not None else _pick_tile(S)
    # pass-2 query tile: decoupled from TS, sized so the (H,TQ,S) f32 softmax
    # live set + resident K/V (double-buffered bf16) fits well under budget.
    def _tq_ok(t):
        softmax_bytes = 3 * H * t * S * 4
        kv_bytes = 2 * 2 * S * D * 2
        return softmax_bytes + kv_bytes <= vmem_limit // 2
    TQ = seq_tile if seq_tile is not None else _pick_tile(S, _tq_ok)
    n_s, n_q = S // TS, S // TQ

    # bf16 weights for the MXU; biases / LN params stay f32
    wq = params['wq'].astype(bf16)
    wk = params['wk'].astype(bf16)
    wv = params['wv'].astype(bf16)
    wo_h = params['wo'].reshape(H, d_k, D).astype(bf16)     # head-major W_o
    fc1_w = params['fc1_w'].astype(bf16)
    fc2_w = params['fc2_w'].astype(bf16)

    # additive mask bias in bf16 (same softmax result as masked_fill with -1e30)
    bias = jnp.where(tgt_mask == 0, -1e30, 0.0).astype(bf16)

    cparams = pltpu.CompilerParams(
        dimension_semantics=("parallel", "parallel"),
        vmem_limit_bytes=vmem_limit,
    )

    def const_spec(shape):
        n = len(shape)
        idx = lambda b, s, _n=n: (0,) * _n
        if single_buffer_consts:
            return pl.BlockSpec(shape, idx, pipeline_mode=pl.Buffered(1))
        return pl.BlockSpec(shape, idx)

    # ------------------------------ pass 1: Q/K/V ------------------------------
    qkv_kernel = functools.partial(_qkv_proj_kernel, num_heads=H,
                                   scale=1.0 / math.sqrt(d_k))
    head_shape = jax.ShapeDtypeStruct((B, H, S, d_k), bf16)
    q_h, k_h, v_h = pl.pallas_call(
        qkv_kernel,
        out_shape=[head_shape, head_shape, head_shape],
        grid_spec=pl.GridSpec(
            grid=(B, n_s),
            in_specs=[
                pl.BlockSpec((1, TS, D), lambda b, s: (b, s, 0)),   # x
                const_spec((1, D)), const_spec((1, D)),             # ln1 gamma/beta
                const_spec((D, D)), const_spec((1, D)),             # W_q, b_q
                const_spec((D, D)), const_spec((1, D)),             # W_k, b_k
                const_spec((D, D)), const_spec((1, D)),             # W_v, b_v
            ],
            out_specs=[pl.BlockSpec((1, H, TS, d_k), lambda b, s: (b, 0, s, 0))
                       for _ in range(3)],
        ),
        compiler_params=cparams,
    )(x, params['ln1_g'], params['ln1_b'],
      wq, params['bq'], wk, params['bk'], wv, params['bv'])

    # --------------------- pass 2: attention + FFN + residuals -----------------
    attn_kernel = functools.partial(_attn_ffn_kernel, num_heads=H)
    return pl.pallas_call(
        attn_kernel,
        out_shape=jax.ShapeDtypeStruct((B, S, D), x.dtype),
        grid_spec=pl.GridSpec(
            grid=(B, n_q),
            in_specs=[
                pl.BlockSpec((1, TQ, D), lambda b, q: (b, q, 0)),          # x (residual)
                pl.BlockSpec((1, H, TQ, d_k), lambda b, q: (b, 0, q, 0)),  # Q tile
                pl.BlockSpec((1, H, S, d_k), lambda b, q: (b, 0, 0, 0)),   # K (full)
                pl.BlockSpec((1, H, S, d_k), lambda b, q: (b, 0, 0, 0)),   # V (full)
                pl.BlockSpec((TQ, S), lambda b, q: (q, 0)),                # mask bias
                const_spec((H, d_k, D)), const_spec((1, D)),               # W_o, b_o
                const_spec((1, D)), const_spec((1, D)),                    # ln2 gamma/beta
                const_spec((D, F)), const_spec((1, F)),                    # fc1
                const_spec((F, D)), const_spec((1, D)),                    # fc2
            ],
            out_specs=pl.BlockSpec((1, TQ, D), lambda b, q: (b, q, 0)),
        ),
        compiler_params=cparams,
    )(x, q_h, k_h, v_h, bias,
      wo_h, params['bo'],
      params['ln2_g'], params['ln2_b'],
      fc1_w, params['fc1_b'], fc2_w, params['fc2_b'])


def decoder_layer(x, tgt_mask, params, *, num_heads, seq_tile=None):
    try:
        return _decoder_layer_impl(x, tgt_mask, params, num_heads=num_heads,
                                   seq_tile=seq_tile, single_buffer_consts=True)
    except Exception:
        # pl.Buffered(1) (single-buffered constant weights) not supported by this
        # jax build -> fall back to default double buffering.
        return _decoder_layer_impl(x, tgt_mask, params, num_heads=num_heads,
                                   seq_tile=seq_tile, single_buffer_consts=False)


def decoder_layer_ref(x, tgt_mask, params, *, num_heads):
    """Plain-JAX f32 reference mirroring the PyTorch forward (eval mode)."""
    B, S, D = x.shape
    d_k = D // num_heads
    ln = lambda v, g, b: _layer_norm(v, g, b)

    x_ = ln(x, params['ln1_g'], params['ln1_b'])
    q = x_ @ params['wq'] + params['bq']
    k = x_ @ params['wk'] + params['bk']
    v = x_ @ params['wv'] + params['bv']
    split = lambda t: t.reshape(B, S, num_heads, d_k).transpose(0, 2, 1, 3)
    qh, kh, vh = split(q), split(k), split(v)
    scores = jnp.einsum('bhqd,bhkd->bhqk', qh, kh) / math.sqrt(d_k)
    scores = jnp.where(tgt_mask[None, None] == 0, -1e30, scores)
    probs = jax.nn.softmax(scores, axis=-1)
    attn = jnp.einsum('bhqk,bhkd->bhqd', probs, vh)
    attn = attn.transpose(0, 2, 1, 3).reshape(B, S, D)
    attn_out = attn @ params['wo'] + params['bo']
    x_o = x + attn_out
    x_f = ln(x_o, params['ln2_g'], params['ln2_b'])
    ff = jnp.maximum(x_f @ params['fc1_w'] + params['fc1_b'], 0.0) @ params['fc2_w'] + params['fc2_b']
    return x_o + ff


if __name__ == "__main__":
    # Small shapes consistent with the module structure (D multiple of 128 for
    # lane-dense stores; D % num_heads == 0).
    B, S = 2, 16
    d_model, num_heads, d_ff = 128, 4, 256

    key = jax.random.PRNGKey(0)
    keys = jax.random.split(key, 16)

    def w(k, shape, scale=0.02):
        return jax.random.normal(k, shape, dtype=jnp.float32) * scale

    params = dict(
        ln1_g=jnp.ones((1, d_model), jnp.float32),
        ln1_b=jnp.zeros((1, d_model), jnp.float32),
        wq=w(keys[0], (d_model, d_model)), bq=w(keys[1], (1, d_model)),
        wk=w(keys[2], (d_model, d_model)), bk=w(keys[3], (1, d_model)),
        wv=w(keys[4], (d_model, d_model)), bv=w(keys[5], (1, d_model)),
        wo=w(keys[6], (d_model, d_model)), bo=w(keys[7], (1, d_model)),
        ln2_g=jnp.ones((1, d_model), jnp.float32),
        ln2_b=jnp.zeros((1, d_model), jnp.float32),
        fc1_w=w(keys[8], (d_model, d_ff)), fc1_b=w(keys[9], (1, d_ff)),
        fc2_w=w(keys[10], (d_ff, d_model)), fc2_b=w(keys[11], (1, d_model)),
    )

    x = jax.random.normal(keys[12], (B, S, d_model), dtype=jnp.float32)
    tgt_mask = jnp.tril(jnp.ones((S, S), dtype=jnp.float32))  # causal mask

    out = decoder_layer(x, tgt_mask, params, num_heads=num_heads)
    out = jax.block_until_ready(out)

    ref = decoder_layer_ref(x, tgt_mask, params, num_heads=num_heads)
    # bf16 matmul operands with f32 accumulation -> loose-ish tolerance vs f32 ref
    assert jnp.allclose(out, ref, atol=2e-2, rtol=2e-2), "mismatch vs reference"

    print("KERNEL_OK")
</pallas_src>

<mosaic_0001>
module attributes {stable_mosaic.version = 11 : i64} {
  func.func @_qkv_proj_kernel(%arg0: i32, %arg1: i32, %arg2: memref<1x16x128xf32, #tpu.memory_space<vmem>>, %arg3: memref<1x128xf32, #tpu.memory_space<vmem>>, %arg4: memref<1x128xf32, #tpu.memory_space<vmem>>, %arg5: memref<128x128xbf16, #tpu.memory_space<vmem>>, %arg6: memref<1x128xf32, #tpu.memory_space<vmem>>, %arg7: memref<128x128xbf16, #tpu.memory_space<vmem>>, %arg8: memref<1x128xf32, #tpu.memory_space<vmem>>, %arg9: memref<128x128xbf16, #tpu.memory_space<vmem>>, %arg10: memref<1x128xf32, #tpu.memory_space<vmem>>, %arg11: memref<1x4x16x32xbf16, #tpu.memory_space<vmem>>, %arg12: memref<1x4x16x32xbf16, #tpu.memory_space<vmem>>, %arg13: memref<1x4x16x32xbf16, #tpu.memory_space<vmem>>) attributes {dimension_semantics = [#tpu.dimension_semantics<parallel>, #tpu.dimension_semantics<parallel>], iteration_bounds = array<i64: 2, 1>, scalar_prefetch = 0 : i64, scratch_operands = 0 : i64, tpu.core_type = #tpu.core_type<tc>, window_params = [{transform_indices = @transform_0, window_bounds = array<i64: 1, 16, 128>}, {pipeline_mode = #tpu.pipeline_mode<synchronous>, transform_indices = @transform_1, window_bounds = array<i64: 1, 128>}, {pipeline_mode = #tpu.pipeline_mode<synchronous>, transform_indices = @transform_2, window_bounds = array<i64: 1, 128>}, {pipeline_mode = #tpu.pipeline_mode<synchronous>, transform_indices = @transform_3, window_bounds = array<i64: 128, 128>}, {pipeline_mode = #tpu.pipeline_mode<synchronous>, transform_indices = @transform_4, window_bounds = array<i64: 1, 128>}, {pipeline_mode = #tpu.pipeline_mode<synchronous>, transform_indices = @transform_5, window_bounds = array<i64: 128, 128>}, {pipeline_mode = #tpu.pipeline_mode<synchronous>, transform_indices = @transform_6, window_bounds = array<i64: 1, 128>}, {pipeline_mode = #tpu.pipeline_mode<synchronous>, transform_indices = @transform_7, window_bounds = array<i64: 128, 128>}, {pipeline_mode = #tpu.pipeline_mode<synchronous>, transform_indices = @transform_8, window_bounds = array<i64: 1, 128>}, {transform_indices = @transform_9, window_bounds = array<i64: 1, 4, 16, 32>}, {transform_indices = @transform_10, window_bounds = array<i64: 1, 4, 16, 32>}, {transform_indices = @transform_11, window_bounds = array<i64: 1, 4, 16, 32>}]} {
    %c0 = arith.constant 0 : index
    %c0_0 = arith.constant 0 : index
    %c0_1 = arith.constant 0 : index
    %0 = vector.load %arg2[%c0, %c0_0, %c0_1] : memref<1x16x128xf32, #tpu.memory_space<vmem>>, vector<1x16x128xf32>
    %1 = vector.shape_cast %0 : vector<1x16x128xf32> to vector<16x128xf32>
    %c0_2 = arith.constant 0 : index
    %c0_3 = arith.constant 0 : index
    %2 = vector.load %arg3[%c0_2, %c0_3] : memref<1x128xf32, #tpu.memory_space<vmem>>, vector<1x128xf32>
    %c0_4 = arith.constant 0 : index
    %c0_5 = arith.constant 0 : index
    %3 = vector.load %arg4[%c0_4, %c0_5] : memref<1x128xf32, #tpu.memory_space<vmem>>, vector<1x128xf32>
    %cst = arith.constant dense<0.000000e+00> : vector<16xf32>
    %4 = vector.multi_reduction <add>, %1, %cst [1] : vector<16x128xf32> to vector<16xf32>
    %5 = vector.shape_cast %4 : vector<16xf32> to vector<16x1xf32>
    %cst_6 = arith.constant 1.280000e+02 : f32
    %6 = vector.broadcast %cst_6 : f32 to vector<16x1xf32>
    %7 = arith.divf %5, %6 : vector<16x1xf32>
    %8 = vector.broadcast %7 : vector<16x1xf32> to vector<16x128xf32>
    %9 = arith.subf %1, %8 : vector<16x128xf32>
    %10 = arith.mulf %9, %9 : vector<16x128xf32>
    %cst_7 = arith.constant dense<0.000000e+00> : vector<16xf32>
    %11 = vector.multi_reduction <add>, %10, %cst_7 [1] : vector<16x128xf32> to vector<16xf32>
    %12 = vector.shape_cast %11 : vector<16xf32> to vector<16x1xf32>
    %cst_8 = arith.constant 1.280000e+02 : f32
    %13 = vector.broadcast %cst_8 : f32 to vector<16x1xf32>
    %14 = arith.divf %12, %13 : vector<16x1xf32>
    %15 = vector.broadcast %7 : vector<16x1xf32> to vector<16x128xf32>
    %16 = arith.subf %1, %15 : vector<16x128xf32>
    %cst_9 = arith.constant 9.99999974E-6 : f32
    %17 = vector.broadcast %cst_9 : f32 to vector<16x1xf32>
    %18 = arith.addf %14, %17 : vector<16x1xf32>
    %19 = math.rsqrt %18 : vector<16x1xf32>
    %20 = vector.broadcast %19 : vector<16x1xf32> to vector<16x128xf32>
    %21 = arith.mulf %16, %20 : vector<16x128xf32>
    %22 = vector.broadcast %2 : vector<1x128xf32> to vector<16x128xf32>
    %23 = arith.mulf %21, %22 : vector<16x128xf32>
    %24 = vector.broadcast %3 : vector<1x128xf32> to vector<16x128xf32>
    %25 = arith.addf %23, %24 : vector<16x128xf32>
    %26 = arith.truncf %25 : vector<16x128xf32> to vector<16x128xbf16>
    %c0_10 = arith.constant 0 : index
    %c0_11 = arith.constant 0 : index
    %27 = vector.load %arg5[%c0_10, %c0_11] : memref<128x128xbf16, #tpu.memory_space<vmem>>, vector<128x128xbf16>
    %cst_12 = arith.constant dense<0.000000e+00> : vector<16x128xf32>
    %28 = tpu.matmul %26, %27, %cst_12 {dimension_numbers = #tpu.dot_dimension_numbers<[1], [0], [0], [1], [0, 0, 1, 1], [], []>} : vector<16x128xbf16>, vector<128x128xbf16>, vector<16x128xf32> -> vector<16x128xf32>
    %c0_13 = arith.constant 0 : index
    %c0_14 = arith.constant 0 : index
    %29 = vector.load %arg6[%c0_13, %c0_14] : memref<1x128xf32, #tpu.memory_space<vmem>>, vector<1x128xf32>
    %30 = vector.broadcast %29 : vector<1x128xf32> to vector<16x128xf32>
    %31 = arith.addf %28, %30 : vector<16x128xf32>
    %cst_15 = arith.constant 0.176776692 : f32
    %32 = vector.broadcast %cst_15 : f32 to vector<16x128xf32>
    %33 = arith.mulf %31, %32 : vector<16x128xf32>
    %c0_16 = arith.constant 0 : index
    %c0_17 = arith.constant 0 : index
    %34 = vector.load %arg7[%c0_16, %c0_17] : memref<128x128xbf16, #tpu.memory_space<vmem>>, vector<128x128xbf16>
    %cst_18 = arith.constant dense<0.000000e+00> : vector<16x128xf32>
    %35 = tpu.matmul %26, %34, %cst_18 {dimension_numbers = #tpu.dot_dimension_numbers<[1], [0], [0], [1], [0, 0, 1, 1], [], []>} : vector<16x128xbf16>, vector<128x128xbf16>, vector<16x128xf32> -> vector<16x128xf32>
    %c0_19 = arith.constant 0 : index
    %c0_20 = arith.constant 0 : index
    %36 = vector.load %arg8[%c0_19, %c0_20] : memref<1x128xf32, #tpu.memory_space<vmem>>, vector<1x128xf32>
    %37 = vector.broadcast %36 : vector<1x128xf32> to vector<16x128xf32>
    %38 = arith.addf %35, %37 : vector<16x128xf32>
    %c0_21 = arith.constant 0 : index
    %c0_22 = arith.constant 0 : index
    %39 = vector.load %arg9[%c0_21, %c0_22] : memref<128x128xbf16, #tpu.memory_space<vmem>>, vector<128x128xbf16>
    %cst_23 = arith.constant dense<0.000000e+00> : vector<16x128xf32>
    %40 = tpu.matmul %26, %39, %cst_23 {dimension_numbers = #tpu.dot_dimension_numbers<[1], [0], [0], [1], [0, 0, 1, 1], [], []>} : vector<16x128xbf16>, vector<128x128xbf16>, vector<16x128xf32> -> vector<16x128xf32>
    %c0_24 = arith.constant 0 : index
    %c0_25 = arith.constant 0 : index
    %41 = vector.load %arg10[%c0_24, %c0_25] : memref<1x128xf32, #tpu.memory_space<vmem>>, vector<1x128xf32>
    %42 = vector.broadcast %41 : vector<1x128xf32> to vector<16x128xf32>
    %43 = arith.addf %40, %42 : vector<16x128xf32>
    %44 = arith.truncf %33 : vector<16x128xf32> to vector<16x128xbf16>
    %45 = arith.truncf %38 : vector<16x128xf32> to vector<16x128xbf16>
    %46 = arith.truncf %43 : vector<16x128xf32> to vector<16x128xbf16>
    %47 = vector.extract_strided_slice %44 {offsets = [0, 0], sizes = [16, 32], strides = [1, 1]} : vector<16x128xbf16> to vector<16x32xbf16>
    %c0_26 = arith.constant 0 : index
    %c0_27 = arith.constant 0 : index
    %c0_28 = arith.constant 0 : index
    %c0_29 = arith.constant 0 : index
    %48 = vector.load %arg11[%c0_26, %c0_27, %c0_28, %c0_29] : memref<1x4x16x32xbf16, #tpu.memory_space<vmem>>, vector<1x1x16x32xbf16>
    %49 = vector.shape_cast %48 : vector<1x1x16x32xbf16> to vector<16x32xbf16>
    %50 = vector.shape_cast %47 : vector<16x32xbf16> to vector<1x1x16x32xbf16>
    tpu.vector_store %arg11[%c0_26, %c0_27, %c0_28, %c0_29], %50 {strides = array<i32>} : memref<1x4x16x32xbf16, #tpu.memory_space<vmem>>, vector<1x1x16x32xbf16>,
    %51 = vector.extract_strided_slice %45 {offsets = [0, 0], sizes = [16, 32], strides = [1, 1]} : vector<16x128xbf16> to vector<16x32xbf16>
    %c0_30 = arith.constant 0 : index
    %c0_31 = arith.constant 0 : index
    %c0_32 = arith.constant 0 : index
    %c0_33 = arith.constant 0 : index
    %52 = vector.load %arg12[%c0_30, %c0_31, %c0_32, %c0_33] : memref<1x4x16x32xbf16, #tpu.memory_space<vmem>>, vector<1x1x16x32xbf16>
    %53 = vector.shape_cast %52 : vector<1x1x16x32xbf16> to vector<16x32xbf16>
    %54 = vector.shape_cast %51 : vector<16x32xbf16> to vector<1x1x16x32xbf16>
    tpu.vector_store %arg12[%c0_30, %c0_31, %c0_32, %c0_33], %54 {strides = array<i32>} : memref<1x4x16x32xbf16, #tpu.memory_space<vmem>>, vector<1x1x16x32xbf16>,
    %55 = vector.extract_strided_slice %46 {offsets = [0, 0], sizes = [16, 32], strides = [1, 1]} : vector<16x128xbf16> to vector<16x32xbf16>
    %c0_34 = arith.constant 0 : index
    %c0_35 = arith.constant 0 : index
    %c0_36 = arith.constant 0 : index
    %c0_37 = arith.constant 0 : index
    %56 = vector.load %arg13[%c0_34, %c0_35, %c0_36, %c0_37] : memref<1x4x16x32xbf16, #tpu.memory_space<vmem>>, vector<1x1x16x32xbf16>
    %57 = vector.shape_cast %56 : vector<1x1x16x32xbf16> to vector<16x32xbf16>
    %58 = vector.shape_cast %55 : vector<16x32xbf16> to vector<1x1x16x32xbf16>
    tpu.vector_store %arg13[%c0_34, %c0_35, %c0_36, %c0_37], %58 {strides = array<i32>} : memref<1x4x16x32xbf16, #tpu.memory_space<vmem>>, vector<1x1x16x32xbf16>,
    %59 = vector.extract_strided_slice %44 {offsets = [0, 32], sizes = [16, 32], strides = [1, 1]} : vector<16x128xbf16> to vector<16x32xbf16>
    %c0_38 = arith.constant 0 : index
    %c1 = arith.constant 1 : index
    %c0_39 = arith.constant 0 : index
    %c0_40 = arith.constant 0 : index
    %60 = vector.load %arg11[%c0_38, %c1, %c0_39, %c0_40] : memref<1x4x16x32xbf16, #tpu.memory_space<vmem>>, vector<1x1x16x32xbf16>
    %61 = vector.shape_cast %60 : vector<1x1x16x32xbf16> to vector<16x32xbf16>
    %62 = vector.shape_cast %59 : vector<16x32xbf16> to vector<1x1x16x32xbf16>
    tpu.vector_store %arg11[%c0_38, %c1, %c0_39, %c0_40], %62 {strides = array<i32>} : memref<1x4x16x32xbf16, #tpu.memory_space<vmem>>, vector<1x1x16x32xbf16>,
    %63 = vector.extract_strided_slice %45 {offsets = [0, 32], sizes = [16, 32], strides = [1, 1]} : vector<16x128xbf16> to vector<16x32xbf16>
    %c0_41 = arith.constant 0 : index
    %c1_42 = arith.constant 1 : index
    %c0_43 = arith.constant 0 : index
    %c0_44 = arith.constant 0 : index
    %64 = vector.load %arg12[%c0_41, %c1_42, %c0_43, %c0_44] : memref<1x4x16x32xbf16, #tpu.memory_space<vmem>>, vector<1x1x16x32xbf16>
    %65 = vector.shape_cast %64 : vector<1x1x16x32xbf16> to vector<16x32xbf16>
    %66 = vector.shape_cast %63 : vector<16x32xbf16> to vector<1x1x16x32xbf16>
    tpu.vector_store %arg12[%c0_41, %c1_42, %c0_43, %c0_44], %66 {strides = array<i32>} : memref<1x4x16x32xbf16, #tpu.memory_space<vmem>>, vector<1x1x16x32xbf16>,
    %67 = vector.extract_strided_slice %46 {offsets = [0, 32], sizes = [16, 32], strides = [1, 1]} : vector<16x128xbf16> to vector<16x32xbf16>
    %c0_45 = arith.constant 0 : index
    %c1_46 = arith.constant 1 : index
    %c0_47 = arith.constant 0 : index
    %c0_48 = arith.constant 0 : index
    %68 = vector.load %arg13[%c0_45, %c1_46, %c0_47, %c0_48] : memref<1x4x16x32xbf16, #tpu.memory_space<vmem>>, vector<1x1x16x32xbf16>
    %69 = vector.shape_cast %68 : vector<1x1x16x32xbf16> to vector<16x32xbf16>
    %70 = vector.shape_cast %67 : vector<16x32xbf16> to vector<1x1x16x32xbf16>
    tpu.vector_store %arg13[%c0_45, %c1_46, %c0_47, %c0_48], %70 {strides = array<i32>} : memref<1x4x16x32xbf16, #tpu.memory_space<vmem>>, vector<1x1x16x32xbf16>,
    %71 = vector.extract_strided_slice %44 {offsets = [0, 64], sizes = [16, 32], strides = [1, 1]} : vector<16x128xbf16> to vector<16x32xbf16>
    %c0_49 = arith.constant 0 : index
    %c2 = arith.constant 2 : index
    %c0_50 = arith.constant 0 : index
    %c0_51 = arith.constant 0 : index
    %72 = vector.load %arg11[%c0_49, %c2, %c0_50, %c0_51] : memref<1x4x16x32xbf16, #tpu.memory_space<vmem>>, vector<1x1x16x32xbf16>
    %73 = vector.shape_cast %72 : vector<1x1x16x32xbf16> to vector<16x32xbf16>
    %74 = vector.shape_cast %71 : vector<16x32xbf16> to vector<1x1x16x32xbf16>
    tpu.vector_store %arg11[%c0_49, %c2, %c0_50, %c0_51], %74 {strides = array<i32>} : memref<1x4x16x32xbf16, #tpu.memory_space<vmem>>, vector<1x1x16x32xbf16>,
    %75 = vector.extract_strided_slice %45 {offsets = [0, 64], sizes = [16, 32], strides = [1, 1]} : vector<16x128xbf16> to vector<16x32xbf16>
    %c0_52 = arith.constant 0 : index
    %c2_53 = arith.constant 2 : index
    %c0_54 = arith.constant 0 : index
    %c0_55 = arith.constant 0 : index
    %76 = vector.load %arg12[%c0_52, %c2_53, %c0_54, %c0_55] : memref<1x4x16x32xbf16, #tpu.memory_space<vmem>>, vector<1x1x16x32xbf16>
    %77 = vector.shape_cast %76 : vector<1x1x16x32xbf16> to vector<16x32xbf16>
    %78 = vector.shape_cast %75 : vector<16x32xbf16> to vector<1x1x16x32xbf16>
    tpu.vector_store %arg12[%c0_52, %c2_53, %c0_54, %c0_55], %78 {strides = array<i32>} : memref<1x4x16x32xbf16, #tpu.memory_space<vmem>>, vector<1x1x16x32xbf16>,
    %79 = vector.extract_strided_slice %46 {offsets = [0, 64], sizes = [16, 32], strides = [1, 1]} : vector<16x128xbf16> to vector<16x32xbf16>
    %c0_56 = arith.constant 0 : index
    %c2_57 = arith.constant 2 : index
    %c0_58 = arith.constant 0 : index
    %c0_59 = arith.constant 0 : index
    %80 = vector.load %arg13[%c0_56, %c2_57, %c0_58, %c0_59] : memref<1x4x16x32xbf16, #tpu.memory_space<vmem>>, vector<1x1x16x32xbf16>
    %81 = vector.shape_cast %80 : vector<1x1x16x32xbf16> to vector<16x32xbf16>
    %82 = vector.shape_cast %79 : vector<16x32xbf16> to vector<1x1x16x32xbf16>
    tpu.vector_store %arg13[%c0_56, %c2_57, %c0_58, %c0_59], %82 {strides = array<i32>} : memref<1x4x16x32xbf16, #tpu.memory_space<vmem>>, vector<1x1x16x32xbf16>,
    %83 = vector.extract_strided_slice %44 {offsets = [0, 96], sizes = [16, 32], strides = [1, 1]} : vector<16x128xbf16> to vector<16x32xbf16>
    %c0_60 = arith.constant 0 : index
    %c3 = arith.constant 3 : index
    %c0_61 = arith.constant 0 : index
    %c0_62 = arith.constant 0 : index
    %84 = vector.load %arg11[%c0_60, %c3, %c0_61, %c0_62] : memref<1x4x16x32xbf16, #tpu.memory_space<vmem>>, vector<1x1x16x32xbf16>
    %85 = vector.shape_cast %84 : vector<1x1x16x32xbf16> to vector<16x32xbf16>
    %86 = vector.shape_cast %83 : vector<16x32xbf16> to vector<1x1x16x32xbf16>
    tpu.vector_store %arg11[%c0_60, %c3, %c0_61, %c0_62], %86 {strides = array<i32>} : memref<1x4x16x32xbf16, #tpu.memory_space<vmem>>, vector<1x1x16x32xbf16>,
    %87 = vector.extract_strided_slice %45 {offsets = [0, 96], sizes = [16, 32], strides = [1, 1]} : vector<16x128xbf16> to vector<16x32xbf16>
    %c0_63 = arith.constant 0 : index
    %c3_64 = arith.constant 3 : index
    %c0_65 = arith.constant 0 : index
    %c0_66 = arith.constant 0 : index
    %88 = vector.load %arg12[%c0_63, %c3_64, %c0_65, %c0_66] : memref<1x4x16x32xbf16, #tpu.memory_space<vmem>>, vector<1x1x16x32xbf16>
    %89 = vector.shape_cast %88 : vector<1x1x16x32xbf16> to vector<16x32xbf16>
    %90 = vector.shape_cast %87 : vector<16x32xbf16> to vector<1x1x16x32xbf16>
    tpu.vector_store %arg12[%c0_63, %c3_64, %c0_65, %c0_66], %90 {strides = array<i32>} : memref<1x4x16x32xbf16, #tpu.memory_space<vmem>>, vector<1x1x16x32xbf16>,
    %91 = vector.extract_strided_slice %46 {offsets = [0, 96], sizes = [16, 32], strides = [1, 1]} : vector<16x128xbf16> to vector<16x32xbf16>
    %c0_67 = arith.constant 0 : index
    %c3_68 = arith.constant 3 : index
    %c0_69 = arith.constant 0 : index
    %c0_70 = arith.constant 0 : index
    %92 = vector.load %arg13[%c0_67, %c3_68, %c0_69, %c0_70] : memref<1x4x16x32xbf16, #tpu.memory_space<vmem>>, vector<1x1x16x32xbf16>
    %93 = vector.shape_cast %92 : vector<1x1x16x32xbf16> to vector<16x32xbf16>
    %94 = vector.shape_cast %91 : vector<16x32xbf16> to vector<1x1x16x32xbf16>
    tpu.vector_store %arg13[%c0_67, %c3_68, %c0_69, %c0_70], %94 {strides = array<i32>} : memref<1x4x16x32xbf16, #tpu.memory_space<vmem>>, vector<1x1x16x32xbf16>,
    return
  }
  func.func @transform_0(%arg0: i32, %arg1: i32) -> (i32, i32, i32) {
    %c0_i32 = arith.constant 0 : i32
    %c0_i32_0 = arith.constant 0 : i32
    return %arg0, %arg1, %c0_i32 : i32, i32, i32
  }
  func.func @transform_1(%arg0: i32, %arg1: i32) -> (i32, i32) {
    %c0_i32 = arith.constant 0 : i32
    %c0_i32_0 = arith.constant 0 : i32
    %c0_i32_1 = arith.constant 0 : i32
    return %c0_i32, %c0_i32_0 : i32, i32
  }
  func.func @transform_2(%arg0: i32, %arg1: i32) -> (i32, i32) {
    %c0_i32 = arith.constant 0 : i32
    %c0_i32_0 = arith.constant 0 : i32
    %c0_i32_1 = arith.constant 0 : i32
    return %c0_i32, %c0_i32_0 : i32, i32
  }
  func.func @transform_3(%arg0: i32, %arg1: i32) -> (i32, i32) {
    %c0_i32 = arith.constant 0 : i32
    %c0_i32_0 = arith.constant 0 : i32
    %c0_i32_1 = arith.constant 0 : i32
    return %c0_i32, %c0_i32_0 : i32, i32
  }
  func.func @transform_4(%arg0: i32, %arg1: i32) -> (i32, i32) {
    %c0_i32 = arith.constant 0 : i32
    %c0_i32_0 = arith.constant 0 : i32
    %c0_i32_1 = arith.constant 0 : i32
    return %c0_i32, %c0_i32_0 : i32, i32
  }
  func.func @transform_5(%arg0: i32, %arg1: i32) -> (i32, i32) {
    %c0_i32 = arith.constant 0 : i32
    %c0_i32_0 = arith.constant 0 : i32
    %c0_i32_1 = arith.constant 0 : i32
    return %c0_i32, %c0_i32_0 : i32, i32
  }
  func.func @transform_6(%arg0: i32, %arg1: i32) -> (i32, i32) {
    %c0_i32 = arith.constant 0 : i32
    %c0_i32_0 = arith.constant 0 : i32
    %c0_i32_1 = arith.constant 0 : i32
    return %c0_i32, %c0_i32_0 : i32, i32
  }
  func.func @transform_7(%arg0: i32, %arg1: i32) -> (i32, i32) {
    %c0_i32 = arith.constant 0 : i32
    %c0_i32_0 = arith.constant 0 : i32
    %c0_i32_1 = arith.constant 0 : i32
    return %c0_i32, %c0_i32_0 : i32, i32
  }
  func.func @transform_8(%arg0: i32, %arg1: i32) -> (i32, i32) {
    %c0_i32 = arith.constant 0 : i32
    %c0_i32_0 = arith.constant 0 : i32
    %c0_i32_1 = arith.constant 0 : i32
    return %c0_i32, %c0_i32_0 : i32, i32
  }
  func.func @transform_9(%arg0: i32, %arg1: i32) -> (i32, i32, i32, i32) {
    %c0_i32 = arith.constant 0 : i32
    %c0_i32_0 = arith.constant 0 : i32
    %c0_i32_1 = arith.constant 0 : i32
    return %arg0, %c0_i32, %arg1, %c0_i32_0 : i32, i32, i32, i32
  }
  func.func @transform_10(%arg0: i32, %arg1: i32) -> (i32, i32, i32, i32) {
    %c0_i32 = arith.constant 0 : i32
    %c0_i32_0 = arith.constant 0 : i32
    %c0_i32_1 = arith.constant 0 : i32
    return %arg0, %c0_i32, %arg1, %c0_i32_0 : i32, i32, i32, i32
  }
  func.func @transform_11(%arg0: i32, %arg1: i32) -> (i32, i32, i32, i32) {
    %c0_i32 = arith.constant 0 : i32
    %c0_i32_0 = arith.constant 0 : i32
    %c0_i32_1 = arith.constant 0 : i32
    return %arg0, %c0_i32, %arg1, %c0_i32_0 : i32, i32, i32, i32
  }
}

module attributes {stable_mosaic.version = 11 : i64} {
  func.func @_qkv_proj_kernel(%arg0: i32, %arg1: i32, %arg2: memref<1x16x128xf32, #tpu.memory_space<vmem>>, %arg3: memref<1x128xf32, #tpu.memory_space<vmem>>, %arg4: memref<1x128xf32, #tpu.memory_space<vmem>>, %arg5: memref<128x128xbf16, #tpu.memory_space<vmem>>, %arg6: memref<1x128xf32, #tpu.memory_space<vmem>>, %arg7: memref<128x128xbf16, #tpu.memory_space<vmem>>, %arg8: memref<1x128xf32, #tpu.memory_space<vmem>>, %arg9: memref<128x128xbf16, #tpu.memory_space<vmem>>, %arg10: memref<1x128xf32, #tpu.memory_space<vmem>>, %arg11: memref<1x4x16x32xbf16, #tpu.memory_space<vmem>>, %arg12: memref<1x4x16x32xbf16, #tpu.memory_space<vmem>>, %arg13: memref<1x4x16x32xbf16, #tpu.memory_space<vmem>>) attributes {dimension_semantics = [#tpu.dimension_semantics<parallel>, #tpu.dimension_semantics<parallel>], iteration_bounds = array<i64: 2, 1>, scalar_prefetch = 0 : i64, scratch_operands = 0 : i64, tpu.core_type = #tpu.core_type<tc>, window_params = [{transform_indices = @transform_0, window_bounds = array<i64: 1, 16, 128>}, {pipeline_mode = #tpu.pipeline_mode<synchronous>, transform_indices = @transform_1, window_bounds = array<i64: 1, 128>}, {pipeline_mode = #tpu.pipeline_mode<synchronous>, transform_indices = @transform_2, window_bounds = array<i64: 1, 128>}, {pipeline_mode = #tpu.pipeline_mode<synchronous>, transform_indices = @transform_3, window_bounds = array<i64: 128, 128>}, {pipeline_mode = #tpu.pipeline_mode<synchronous>, transform_indices = @transform_4, window_bounds = array<i64: 1, 128>}, {pipeline_mode = #tpu.pipeline_mode<synchronous>, transform_indices = @transform_5, window_bounds = array<i64: 128, 128>}, {pipeline_mode = #tpu.pipeline_mode<synchronous>, transform_indices = @transform_6, window_bounds = array<i64: 1, 128>}, {pipeline_mode = #tpu.pipeline_mode<synchronous>, transform_indices = @transform_7, window_bounds = array<i64: 128, 128>}, {pipeline_mode = #tpu.pipeline_mode<synchronous>, transform_indices = @transform_8, window_bounds = array<i64: 1, 128>}, {transform_indices = @transform_9, window_bounds = array<i64: 1, 4, 16, 32>}, {transform_indices = @transform_10, window_bounds = array<i64: 1, 4, 16, 32>}, {transform_indices = @transform_11, window_bounds = array<i64: 1, 4, 16, 32>}]} {
    %c0 = arith.constant 0 : index
    %c0_0 = arith.constant 0 : index
    %c0_1 = arith.constant 0 : index
    %0 = vector.load %arg2[%c0, %c0_0, %c0_1] : memref<1x16x128xf32, #tpu.memory_space<vmem>>, vector<1x16x128xf32>
    %1 = vector.shape_cast %0 : vector<1x16x128xf32> to vector<16x128xf32>
    %c0_2 = arith.constant 0 : index
    %c0_3 = arith.constant 0 : index
    %2 = vector.load %arg3[%c0_2, %c0_3] : memref<1x128xf32, #tpu.memory_space<vmem>>, vector<1x128xf32>
    %c0_4 = arith.constant 0 : index
    %c0_5 = arith.constant 0 : index
    %3 = vector.load %arg4[%c0_4, %c0_5] : memref<1x128xf32, #tpu.memory_space<vmem>>, vector<1x128xf32>
    %cst = arith.constant dense<0.000000e+00> : vector<16xf32>
    %4 = vector.multi_reduction <add>, %1, %cst [1] : vector<16x128xf32> to vector<16xf32>
    %5 = vector.shape_cast %4 : vector<16xf32> to vector<16x1xf32>
    %cst_6 = arith.constant 1.280000e+02 : f32
    %6 = vector.broadcast %cst_6 : f32 to vector<16x1xf32>
    %7 = arith.divf %5, %6 : vector<16x1xf32>
    %8 = vector.broadcast %7 : vector<16x1xf32> to vector<16x128xf32>
    %9 = arith.subf %1, %8 : vector<16x128xf32>
    %10 = arith.mulf %9, %9 : vector<16x128xf32>
    %cst_7 = arith.constant dense<0.000000e+00> : vector<16xf32>
    %11 = vector.multi_reduction <add>, %10, %cst_7 [1] : vector<16x128xf32> to vector<16xf32>
    %12 = vector.shape_cast %11 : vector<16xf32> to vector<16x1xf32>
    %cst_8 = arith.constant 1.280000e+02 : f32
    %13 = vector.broadcast %cst_8 : f32 to vector<16x1xf32>
    %14 = arith.divf %12, %13 : vector<16x1xf32>
    %15 = vector.broadcast %7 : vector<16x1xf32> to vector<16x128xf32>
    %16 = arith.subf %1, %15 : vector<16x128xf32>
    %cst_9 = arith.constant 9.99999974E-6 : f32
    %17 = vector.broadcast %cst_9 : f32 to vector<16x1xf32>
    %18 = arith.addf %14, %17 : vector<16x1xf32>
    %19 = math.rsqrt %18 : vector<16x1xf32>
    %20 = vector.broadcast %19 : vector<16x1xf32> to vector<16x128xf32>
    %21 = arith.mulf %16, %20 : vector<16x128xf32>
    %22 = vector.broadcast %2 : vector<1x128xf32> to vector<16x128xf32>
    %23 = arith.mulf %21, %22 : vector<16x128xf32>
    %24 = vector.broadcast %3 : vector<1x128xf32> to vector<16x128xf32>
    %25 = arith.addf %23, %24 : vector<16x128xf32>
    %26 = arith.truncf %25 : vector<16x128xf32> to vector<16x128xbf16>
    %c0_10 = arith.constant 0 : index
    %c0_11 = arith.constant 0 : index
    %27 = vector.load %arg5[%c0_10, %c0_11] : memref<128x128xbf16, #tpu.memory_space<vmem>>, vector<128x128xbf16>
    %cst_12 = arith.constant dense<0.000000e+00> : vector<16x128xf32>
    %28 = tpu.matmul %26, %27, %cst_12 {dimension_numbers = #tpu.dot_dimension_numbers<[1], [0], [0], [1], [0, 0, 1, 1], [], []>} : vector<16x128xbf16>, vector<128x128xbf16>, vector<16x128xf32> -> vector<16x128xf32>
    %c0_13 = arith.constant 0 : index
    %c0_14 = arith.constant 0 : index
    %29 = vector.load %arg6[%c0_13, %c0_14] : memref<1x128xf32, #tpu.memory_space<vmem>>, vector<1x128xf32>
    %30 = vector.broadcast %29 : vector<1x128xf32> to vector<16x128xf32>
    %31 = arith.addf %28, %30 : vector<16x128xf32>
    %cst_15 = arith.constant 0.176776692 : f32
    %32 = vector.broadcast %cst_15 : f32 to vector<16x128xf32>
    %33 = arith.mulf %31, %32 : vector<16x128xf32>
    %c0_16 = arith.constant 0 : index
    %c0_17 = arith.constant 0 : index
    %34 = vector.load %arg7[%c0_16, %c0_17] : memref<128x128xbf16, #tpu.memory_space<vmem>>, vector<128x128xbf16>
    %cst_18 = arith.constant dense<0.000000e+00> : vector<16x128xf32>
    %35 = tpu.matmul %26, %34, %cst_18 {dimension_numbers = #tpu.dot_dimension_numbers<[1], [0], [0], [1], [0, 0, 1, 1], [], []>} : vector<16x128xbf16>, vector<128x128xbf16>, vector<16x128xf32> -> vector<16x128xf32>
    %c0_19 = arith.constant 0 : index
    %c0_20 = arith.constant 0 : index
    %36 = vector.load %arg8[%c0_19, %c0_20] : memref<1x128xf32, #tpu.memory_space<vmem>>, vector<1x128xf32>
    %37 = vector.broadcast %36 : vector<1x128xf32> to vector<16x128xf32>
    %38 = arith.addf %35, %37 : vector<16x128xf32>
    %c0_21 = arith.constant 0 : index
    %c0_22 = arith.constant 0 : index
    %39 = vector.load %arg9[%c0_21, %c0_22] : memref<128x128xbf16, #tpu.memory_space<vmem>>, vector<128x128xbf16>
    %cst_23 = arith.constant dense<0.000000e+00> : vector<16x128xf32>
    %40 = tpu.matmul %26, %39, %cst_23 {dimension_numbers = #tpu.dot_dimension_numbers<[1], [0], [0], [1], [0, 0, 1, 1], [], []>} : vector<16x128xbf16>, vector<128x128xbf16>, vector<16x128xf32> -> vector<16x128xf32>
    %c0_24 = arith.constant 0 : index
    %c0_25 = arith.constant 0 : index
    %41 = vector.load %arg10[%c0_24, %c0_25] : memref<1x128xf32, #tpu.memory_space<vmem>>, vector<1x128xf32>
    %42 = vector.broadcast %41 : vector<1x128xf32> to vector<16x128xf32>
    %43 = arith.addf %40, %42 : vector<16x128xf32>
    %44 = arith.truncf %33 : vector<16x128xf32> to vector<16x128xbf16>
    %45 = arith.truncf %38 : vector<16x128xf32> to vector<16x128xbf16>
    %46 = arith.truncf %43 : vector<16x128xf32> to vector<16x128xbf16>
    %47 = vector.extract_strided_slice %44 {offsets = [0, 0], sizes = [16, 32], strides = [1, 1]} : vector<16x128xbf16> to vector<16x32xbf16>
    %c0_26 = arith.constant 0 : index
    %c0_27 = arith.constant 0 : index
    %c0_28 = arith.constant 0 : index
    %c0_29 = arith.constant 0 : index
    %48 = vector.load %arg11[%c0_26, %c0_27, %c0_28, %c0_29] : memref<1x4x16x32xbf16, #tpu.memory_space<vmem>>, vector<1x1x16x32xbf16>
    %49 = vector.shape_cast %48 : vector<1x1x16x32xbf16> to vector<16x32xbf16>
    %50 = vector.shape_cast %47 : vector<16x32xbf16> to vector<1x1x16x32xbf16>
    tpu.vector_store %arg11[%c0_26, %c0_27, %c0_28, %c0_29], %50 {strides = array<i32>} : memref<1x4x16x32xbf16, #tpu.memory_space<vmem>>, vector<1x1x16x32xbf16>,
    %51 = vector.extract_strided_slice %45 {offsets = [0, 0], sizes = [16, 32], strides = [1, 1]} : vector<16x128xbf16> to vector<16x32xbf16>
    %c0_30 = arith.constant 0 : index
    %c0_31 = arith.constant 0 : index
    %c0_32 = arith.constant 0 : index
    %c0_33 = arith.constant 0 : index
    %52 = vector.load %arg12[%c0_30, %c0_31, %c0_32, %c0_33] : memref<1x4x16x32xbf16, #tpu.memory_space<vmem>>, vector<1x1x16x32xbf16>
    %53 = vector.shape_cast %52 : vector<1x1x16x32xbf16> to vector<16x32xbf16>
    %54 = vector.shape_cast %51 : vector<16x32xbf16> to vector<1x1x16x32xbf16>
    tpu.vector_store %arg12[%c0_30, %c0_31, %c0_32, %c0_33], %54 {strides = array<i32>} : memref<1x4x16x32xbf16, #tpu.memory_space<vmem>>, vector<1x1x16x32xbf16>,
    %55 = vector.extract_strided_slice %46 {offsets = [0, 0], sizes = [16, 32], strides = [1, 1]} : vector<16x128xbf16> to vector<16x32xbf16>
    %c0_34 = arith.constant 0 : index
    %c0_35 = arith.constant 0 : index
    %c0_36 = arith.constant 0 : index
    %c0_37 = arith.constant 0 : index
    %56 = vector.load %arg13[%c0_34, %c0_35, %c0_36, %c0_37] : memref<1x4x16x32xbf16, #tpu.memory_space<vmem>>, vector<1x1x16x32xbf16>
    %57 = vector.shape_cast %56 : vector<1x1x16x32xbf16> to vector<16x32xbf16>
    %58 = vector.shape_cast %55 : vector<16x32xbf16> to vector<1x1x16x32xbf16>
    tpu.vector_store %arg13[%c0_34, %c0_35, %c0_36, %c0_37], %58 {strides = array<i32>} : memref<1x4x16x32xbf16, #tpu.memory_space<vmem>>, vector<1x1x16x32xbf16>,
    %59 = vector.extract_strided_slice %44 {offsets = [0, 32], sizes = [16, 32], strides = [1, 1]} : vector<16x128xbf16> to vector<16x32xbf16>
    %c0_38 = arith.constant 0 : index
    %c1 = arith.constant 1 : index
    %c0_39 = arith.constant 0 : index
    %c0_40 = arith.constant 0 : index
    %60 = vector.load %arg11[%c0_38, %c1, %c0_39, %c0_40] : memref<1x4x16x32xbf16, #tpu.memory_space<vmem>>, vector<1x1x16x32xbf16>
    %61 = vector.shape_cast %60 : vector<1x1x16x32xbf16> to vector<16x32xbf16>
    %62 = vector.shape_cast %59 : vector<16x32xbf16> to vector<1x1x16x32xbf16>
    tpu.vector_store %arg11[%c0_38, %c1, %c0_39, %c0_40], %62 {strides = array<i32>} : memref<1x4x16x32xbf16, #tpu.memory_space<vmem>>, vector<1x1x16x32xbf16>,
    %63 = vector.extract_strided_slice %45 {offsets = [0, 32], sizes = [16, 32], strides = [1, 1]} : vector<16x128xbf16> to vector<16x32xbf16>
    %c0_41 = arith.constant 0 : index
    %c1_42 = arith.constant 1 : index
    %c0_43 = arith.constant 0 : index
    %c0_44 = arith.constant 0 : index
    %64 = vector.load %arg12[%c0_41, %c1_42, %c0_43, %c0_44] : memref<1x4x16x32xbf16, #tpu.memory_space<vmem>>, vector<1x1x16x32xbf16>
    %65 = vector.shape_cast %64 : vector<1x1x16x32xbf16> to vector<16x32xbf16>
    %66 = vector.shape_cast %63 : vector<16x32xbf16> to vector<1x1x16x32xbf16>
    tpu.vector_store %arg12[%c0_41, %c1_42, %c0_43, %c0_44], %66 {strides = array<i32>} : memref<1x4x16x32xbf16, #tpu.memory_space<vmem>>, vector<1x1x16x32xbf16>,
    %67 = vector.extract_strided_slice %46 {offsets = [0, 32], sizes = [16, 32], strides = [1, 1]} : vector<16x128xbf16> to vector<16x32xbf16>
    %c0_45 = arith.constant 0 : index
    %c1_46 = arith.constant 1 : index
    %c0_47 = arith.constant 0 : index
    %c0_48 = arith.constant 0 : index
    %68 = vector.load %arg13[%c0_45, %c1_46, %c0_47, %c0_48] : memref<1x4x16x32xbf16, #tpu.memory_space<vmem>>, vector<1x1x16x32xbf16>
    %69 = vector.shape_cast %68 : vector<1x1x16x32xbf16> to vector<16x32xbf16>
    %70 = vector.shape_cast %67 : vector<16x32xbf16> to vector<1x1x16x32xbf16>
    tpu.vector_store %arg13[%c0_45, %c1_46, %c0_47, %c0_48], %70 {strides = array<i32>} : memref<1x4x16x32xbf16, #tpu.memory_space<vmem>>, vector<1x1x16x32xbf16>,
    %71 = vector.extract_strided_slice %44 {offsets = [0, 64], sizes = [16, 32], strides = [1, 1]} : vector<16x128xbf16> to vector<16x32xbf16>
    %c0_49 = arith.constant 0 : index
    %c2 = arith.constant 2 : index
    %c0_50 = arith.constant 0 : index
    %c0_51 = arith.constant 0 : index
    %72 = vector.load %arg11[%c0_49, %c2, %c0_50, %c0_51] : memref<1x4x16x32xbf16, #tpu.memory_space<vmem>>, vector<1x1x16x32xbf16>
    %73 = vector.shape_cast %72 : vector<1x1x16x32xbf16> to vector<16x32xbf16>
    %74 = vector.shape_cast %71 : vector<16x32xbf16> to vector<1x1x16x32xbf16>
    tpu.vector_store %arg11[%c0_49, %c2, %c0_50, %c0_51], %74 {strides = array<i32>} : memref<1x4x16x32xbf16, #tpu.memory_space<vmem>>, vector<1x1x16x32xbf16>,
    %75 = vector.extract_strided_slice %45 {offsets = [0, 64], sizes = [16, 32], strides = [1, 1]} : vector<16x128xbf16> to vector<16x32xbf16>
    %c0_52 = arith.constant 0 : index
    %c2_53 = arith.constant 2 : index
    %c0_54 = arith.constant 0 : index
    %c0_55 = arith.constant 0 : index
    %76 = vector.load %arg12[%c0_52, %c2_53, %c0_54, %c0_55] : memref<1x4x16x32xbf16, #tpu.memory_space<vmem>>, vector<1x1x16x32xbf16>
    %77 = vector.shape_cast %76 : vector<1x1x16x32xbf16> to vector<16x32xbf16>
    %78 = vector.shape_cast %75 : vector<16x32xbf16> to vector<1x1x16x32xbf16>
    tpu.vector_store %arg12[%c0_52, %c2_53, %c0_54, %c0_55], %78 {strides = array<i32>} : memref<1x4x16x32xbf16, #tpu.memory_space<vmem>>, vector<1x1x16x32xbf16>,
    %79 = vector.extract_strided_slice %46 {offsets = [0, 64], sizes = [16, 32], strides = [1, 1]} : vector<16x128xbf16> to vector<16x32xbf16>
    %c0_56 = arith.constant 0 : index
    %c2_57 = arith.constant 2 : index
    %c0_58 = arith.constant 0 : index
    %c0_59 = arith.constant 0 : index
    %80 = vector.load %arg13[%c0_56, %c2_57, %c0_58, %c0_59] : memref<1x4x16x32xbf16, #tpu.memory_space<vmem>>, vector<1x1x16x32xbf16>
    %81 = vector.shape_cast %80 : vector<1x1x16x32xbf16> to vector<16x32xbf16>
    %82 = vector.shape_cast %79 : vector<16x32xbf16> to vector<1x1x16x32xbf16>
    tpu.vector_store %arg13[%c0_56, %c2_57, %c0_58, %c0_59], %82 {strides = array<i32>} : memref<1x4x16x32xbf16, #tpu.memory_space<vmem>>, vector<1x1x16x32xbf16>,
    %83 = vector.extract_strided_slice %44 {offsets = [0, 96], sizes = [16, 32], strides = [1, 1]} : vector<16x128xbf16> to vector<16x32xbf16>
    %c0_60 = arith.constant 0 : index
    %c3 = arith.constant 3 : index
    %c0_61 = arith.constant 0 : index
    %c0_62 = arith.constant 0 : index
    %84 = vector.load %arg11[%c0_60, %c3, %c0_61, %c0_62] : memref<1x4x16x32xbf16, #tpu.memory_space<vmem>>, vector<1x1x16x32xbf16>
    %85 = vector.shape_cast %84 : vector<1x1x16x32xbf16> to vector<16x32xbf16>
    %86 = vector.shape_cast %83 : vector<16x32xbf16> to vector<1x1x16x32xbf16>
    tpu.vector_store %arg11[%c0_60, %c3, %c0_61, %c0_62], %86 {strides = array<i32>} : memref<1x4x16x32xbf16, #tpu.memory_space<vmem>>, vector<1x1x16x32xbf16>,
    %87 = vector.extract_strided_slice %45 {offsets = [0, 96], sizes = [16, 32], strides = [1, 1]} : vector<16x128xbf16> to vector<16x32xbf16>
    %c0_63 = arith.constant 0 : index
    %c3_64 = arith.constant 3 : index
    %c0_65 = arith.constant 0 : index
    %c0_66 = arith.constant 0 : index
    %88 = vector.load %arg12[%c0_63, %c3_64, %c0_65, %c0_66] : memref<1x4x16x32xbf16, #tpu.memory_space<vmem>>, vector<1x1x16x32xbf16>
    %89 = vector.shape_cast %88 : vector<1x1x16x32xbf16> to vector<16x32xbf16>
    %90 = vector.shape_cast %87 : vector<16x32xbf16> to vector<1x1x16x32xbf16>
    tpu.vector_store %arg12[%c0_63, %c3_64, %c0_65, %c0_66], %90 {strides = array<i32>} : memref<1x4x16x32xbf16, #tpu.memory_space<vmem>>, vector<1x1x16x32xbf16>,
    %91 = vector.extract_strided_slice %46 {offsets = [0, 96], sizes = [16, 32], strides = [1, 1]} : vector<16x128xbf16> to vector<16x32xbf16>
    %c0_67 = arith.constant 0 : index
    %c3_68 = arith.constant 3 : index
    %c0_69 = arith.constant 0 : index
    %c0_70 = arith.constant 0 : index
    %92 = vector.load %arg13[%c0_67, %c3_68, %c0_69, %c0_70] : memref<1x4x16x32xbf16, #tpu.memory_space<vmem>>, vector<1x1x16x32xbf16>
    %93 = vector.shape_cast %92 : vector<1x1x16x32xbf16> to vector<16x32xbf16>
    %94 = vector.shape_cast %91 : vector<16x32xbf16> to vector<1x1x16x32xbf16>
    tpu.vector_store %arg13[%c0_67, %c3_68, %c0_69, %c0_70], %94 {strides = array<i32>} : memref<1x4x16x32xbf16, #tpu.memory_space<vmem>>, vector<1x1x16x32xbf16>,
    return
  }
  func.func @transform_0(%arg0: i32, %arg1: i32) -> (i32, i32, i32) {
    %c0_i32 = arith.constant 0 : i32
    %c0_i32_0 = arith.constant 0 : i32
    return %arg0, %arg1, %c0_i32 : i32, i32, i32
  }
  func.func @transform_1(%arg0: i32, %arg1: i32) -> (i32, i32) {
    %c0_i32 = arith.constant 0 : i32
    %c0_i32_0 = arith.constant 0 : i32
    %c0_i32_1 = arith.constant 0 : i32
    return %c0_i32, %c0_i32_0 : i32, i32
  }
  func.func @transform_2(%arg0: i32, %arg1: i32) -> (i32, i32) {
    %c0_i32 = arith.constant 0 : i32
    %c0_i32_0 = arith.constant 0 : i32
    %c0_i32_1 = arith.constant 0 : i32
    return %c0_i32, %c0_i32_0 : i32, i32
  }
  func.func @transform_3(%arg0: i32, %arg1: i32) -> (i32, i32) {
    %c0_i32 = arith.constant 0 : i32
    %c0_i32_0 = arith.constant 0 : i32
    %c0_i32_1 = arith.constant 0 : i32
    return %c0_i32, %c0_i32_0 : i32, i32
  }
  func.func @transform_4(%arg0: i32, %arg1: i32) -> (i32, i32) {
    %c0_i32 = arith.constant 0 : i32
    %c0_i32_0 = arith.constant 0 : i32
    %c0_i32_1 = arith.constant 0 : i32
    return %c0_i32, %c0_i32_0 : i32, i32
  }
  func.func @transform_5(%arg0: i32, %arg1: i32) -> (i32, i32) {
    %c0_i32 = arith.constant 0 : i32
    %c0_i32_0 = arith.constant 0 : i32
    %c0_i32_1 = arith.constant 0 : i32
    return %c0_i32, %c0_i32_0 : i32, i32
  }
  func.func @transform_6(%arg0: i32, %arg1: i32) -> (i32, i32) {
    %c0_i32 = arith.constant 0 : i32
    %c0_i32_0 = arith.constant 0 : i32
    %c0_i32_1 = arith.constant 0 : i32
    return %c0_i32, %c0_i32_0 : i32, i32
  }
  func.func @transform_7(%arg0: i32, %arg1: i32) -> (i32, i32) {
    %c0_i32 = arith.constant 0 : i32
    %c0_i32_0 = arith.constant 0 : i32
    %c0_i32_1 = arith.constant 0 : i32
    return %c0_i32, %c0_i32_0 : i32, i32
  }
  func.func @transform_8(%arg0: i32, %arg1: i32) -> (i32, i32) {
    %c0_i32 = arith.constant 0 : i32
    %c0_i32_0 = arith.constant 0 : i32
    %c0_i32_1 = arith.constant 0 : i32
    return %c0_i32, %c0_i32_0 : i32, i32
  }
  func.func @transform_9(%arg0: i32, %arg1: i32) -> (i32, i32, i32, i32) {
    %c0_i32 = arith.constant 0 : i32
    %c0_i32_0 = arith.constant 0 : i32
    %c0_i32_1 = arith.constant 0 : i32
    return %arg0, %c0_i32, %arg1, %c0_i32_0 : i32, i32, i32, i32
  }
  func.func @transform_10(%arg0: i32, %arg1: i32) -> (i32, i32, i32, i32) {
    %c0_i32 = arith.constant 0 : i32
    %c0_i32_0 = arith.constant 0 : i32
    %c0_i32_1 = arith.constant 0 : i32
    return %arg0, %c0_i32, %arg1, %c0_i32_0 : i32, i32, i32, i32
  }
  func.func @transform_11(%arg0: i32, %arg1: i32) -> (i32, i32, i32, i32) {
    %c0_i32 = arith.constant 0 : i32
    %c0_i32_0 = arith.constant 0 : i32
    %c0_i32_1 = arith.constant 0 : i32
    return %arg0, %c0_i32, %arg1, %c0_i32_0 : i32, i32, i32, i32
  }
}

</mosaic_0001>

<bundles_post_ra>
// kernel: tpu_custom_call.1
= control target key start
LH: loop header
LB: loop body
LE: loop exit
PB: predicated region body
PF: predicated region fallthrough
CT: control target
= control target key end

     0   :  { %s2380_s0 = inlined_call_operand.hbm [shape: f32[2,16,128], index: 0, kind: input, shape index: {}]   ;;  %s2381_s1 = inlined_call_operand.vmem [shape: f32[1,128], index: 1, kind: input, shape index: {}]   ;;  %s2382_s2 = inlined_call_operand.vmem [shape: f32[1,128], index: 2, kind: input, shape index: {}]   ;;  %s2383_s3 = inlined_call_operand.hbm [shape: bf16[128,128], index: 3, kind: input, shape index: {}]   ;;  %s2384_s4 = inlined_call_operand.vmem [shape: f32[1,128], index: 4, kind: input, shape index: {}]   ;;  %s2385_s5 = inlined_call_operand.hbm [shape: bf16[128,128], index: 5, kind: input, shape index: {}]   ;;  %s2386_s6 = inlined_call_operand.vmem [shape: f32[1,128], index: 6, kind: input, shape index: {}]   ;;  %s2387_s7 = inlined_call_operand.hbm [shape: bf16[128,128], index: 7, kind: input, shape index: {}]   ;;  %s2388_s8 = inlined_call_operand.vmem [shape: f32[1,128], index: 8, kind: input, shape index: {}]   ;;  %s2389_s9 = inlined_call_operand.hbm [shape: bf16[2,4,16,32], index: 9, kind: output, shape index: {0}]   ;;  %s2390_s10 = inlined_call_operand.hbm [shape: bf16[2,4,16,32], index: 10, kind: output, shape index: {1}]   ;;  %s2391_s11 = inlined_call_operand.hbm [shape: bf16[2,4,16,32], index: 11, kind: output, shape index: {2}]  }
   0x1   :  { %2405 = sst [smem:[#allocation22_spill]] %s2380_s0 }
   0x2   :  { %2406 = sst [smem:[#allocation23_spill]] %s2388_s8 }
   0x3   :  { %2407 = sst [smem:[#allocation24_spill]] %s2389_s9 }
   0x4   :  { %2408 = sst [smem:[#allocation25_spill]] %s2390_s10 }
   0x5   :  { %2409 = sst [smem:[#allocation26_spill]] %s2391_s11 }
   0x6   :  { %17 = vsyncpa [#allocation3], 0 }
   0x7   :  { %19 = vsyncpa [#allocation3 + $0x1], 0 }
   0x8   :  { %20 = vsyncpa [#allocation6], 0 }
   0x9   :  { %21 = vsyncpa [#allocation9], 0 }
   0xa   :  { %22 = vsyncpa [#allocation4], 0 }
   0xb   :  { %24 = vsyncpa [#allocation4 + $0x1], 0 }
   0xc   :  { %25 = vsyncpa [#allocation12], 0 }
   0xd   :  { %27 = vsyncpa [#allocation12 + $0x1], 0  ;;  %s1896_s17 = smov 0   ;;  %s1898_s18 = smov 0  }
   0xe   :  { %s1900_s19 = smov 0   ;;  %s1902_s20 = smov 0  }
   0xf   :  { %s1904_s21 = smov 0   ;;  %s1906_s22 = smov 0  }
  0x10 LB: > { %2410 = sst [smem:[#allocation19_spill]] %s1797_s17  ;;  %s1927_s23 = sadd.s32 4294967295, %s1817_s22   ;;  %s1817_s22 = sphi %s1906_s22, %s33_s22   ;;  %s1813_s21 = sphi %s1904_s21, %s2445_s21   ;;  %s1809_s20 = sphi %s1902_s20, %s2444_s20   ;;  %s1805_s19 = sphi %s1900_s19, %s2443_s19   ;;  %s1801_s18 = sphi %s1898_s18, %s2442_s18   ;;  %s1797_s17 = sphi %s1896_s17, %s2441_s17  }
  0x11   : > { %2411 = sst [smem:[#allocation20_spill]] %s1809_s20  ;;  %s2392_s24 = sadd.s32 4294967294, %s1817_s22  }
  0x12   : > { %p67_p0 = scmp.ne.s32.totalorder %s1801_s18, %s1797_s17  ;;  %p2396_p1 = scmp.eq.s32.totalorder %s1927_s23, 0 }
  0x13   : > { %p267_p3 = scmp.eq.s32.totalorder %s2392_s24, 1  ;;  %p1235_p5 = scmp.ge.s32.totalorder %s1817_s22, 1 }
  0x14   : > { %p1938_p4 = por %p2396_p1, %p67_p0  ;;  %p330_p7 = scmp.lt.s32.totalorder %s1817_s22, 3 }
  0x15   : > { %p1943_p6 = por %p267_p3, %p67_p0  ;;  %s1819_s28 = smov [#allocation5]  }
  0x16   : > { %s2412_s25 = scalar_select %p1938_p4, 1, 0 }
  0x17   : > { %s2413_s26 = scalar_select %p1943_p6, 1, 0 }
  0x18   : > { %p1948_p8 = pnand %p1235_p5, %p330_p7  ;;  %s348_s29 = sshll.u32 %s1819_s28, 4  ;;  %s1952_s29 = int_to_ptr.vmem [resolvable:$true] %s348_s29 }
  0x19   : > { %2414 = sst [smem:[#allocation21_spill]] %s2413_s26  ;;  %s1820_s12 = smov [#allocation7]  }
  0x1a   : > { %s2415_s27 = scalar_select %p1948_p8, 1, 0 }
  0x1b   : > { %p1432_p9 = pneg %p1948_p8  ;;  %s364_s13 = sshll.u32 %s1820_s12, 4  ;;  %s1963_s13 = int_to_ptr.vmem [resolvable:$true] %s364_s13 }
  0x1c   : > { %s1821_s14 = smov [#allocation8]   ;;  %s1553_s24 = scalar_lea.hbm %s2383_s3, 1024 }
  0x1d   : > { %p1959_p11 = pnand %p1432_p9, %p2396_p1  ;;  %s1965_s15 = sshll.u32 %s1821_s14, 4  ;;  %s381_s15 = int_to_ptr.vmem [resolvable:$true] %s1965_s15 }
  0x1e   : > { %p1554_p12 = scmp.ne.s32.totalorder %s2383_s3, %s1553_s24  ;;  %p1560_p5 = scmp.lt.u32.totalorder %s1553_s24, %s2383_s3 }
  0x1f   : > { %p1975_p13 = pneg %p1959_p11 }
  0x21   : > { %p1556_p0 = pnand %p1975_p13, %p1554_p12 }
  0x23   : > { %p1557_p3 = pneg %p1556_p0 }
  0x25   : > { %p1562_p7 = pnand %p1560_p5, %p1557_p3 }
  0x27   : > { %1565 = shalt.err (!%p1562_p7)
}
  0x28   : > { %s1566_s17 = scalar_lea.vmem %s1952_s29, 1024  ;;  %p1574_p2 = scmp.lt.s32.totalorder %s1952_s29, %s1952_s29 }
  0x29   : > { %p1567_p9 = scmp.ne.s32.totalorder %s1952_s29, %s1566_s17  ;;  %p1575_p6 = scmp.lt.s32.totalorder %s1566_s17, %s1566_s17 }
  0x2b   : > { %p1569_p10 = pnand %p1567_p9, %p1975_p13  ;;  %p1576_p12 = por %p1575_p6, %p1574_p2 }
  0x2d   : > { %p1570_p1 = pneg %p1569_p10 }
  0x2f   : > { %p1577_p0 = pnand %p1576_p12, %p1570_p1 }
  0x31   : > { %1580 = shalt.err (!%p1577_p0)
}
  0x32   : > { %s1822_s26 = smov 64   ;;  %s1823_s24 = smov 4  }
  0x33   : > { %1435 = dma.hbm_to_vmem [thread:$0]  (!%p1959_p11), %s2383_s3, 1024, %s1952_s29, [#allocation6], %s1822_s26, %s1822_s26, %s1823_s24  }
  0x34   : > { %s1581_s17 = scalar_lea.hbm %s2385_s5, 1024 }
  0x35   : > { %p1582_p1 = scmp.ne.s32.totalorder %s2385_s5, %s1581_s17  ;;  %p1588_p10 = scmp.lt.u32.totalorder %s1581_s17, %s2385_s5 }
  0x37   : > { %p1584_p2 = pnand %p1582_p1, %p1975_p13 }
  0x39   : > { %p1585_p6 = pneg %p1584_p2 }
  0x3b   : > { %p1590_p3 = pnand %p1588_p10, %p1585_p6 }
  0x3d   : > { %1593 = shalt.err (!%p1590_p3)
}
  0x3e   : > { %s1594_s29 = scalar_lea.vmem %s1963_s13, 1024  ;;  %p1602_p12 = scmp.lt.s32.totalorder %s1963_s13, %s1963_s13 }
  0x3f   : > { %p1595_p5 = scmp.ne.s32.totalorder %s1963_s13, %s1594_s29  ;;  %p1603_p0 = scmp.lt.s32.totalorder %s1594_s29, %s1594_s29 }
  0x41   : > { %p1597_p7 = pnand %p1595_p5, %p1975_p13  ;;  %p1604_p1 = por %p1603_p0, %p1602_p12 }
  0x43   : > { %p1598_p9 = pneg %p1597_p7 }
  0x45   : > { %p1605_p2 = pnand %p1604_p1, %p1598_p9 }
  0x47   : > { %1608 = shalt.err (!%p1605_p2)
}
  0x48   : > { %1438 = dma.hbm_to_vmem [thread:$0]  (!%p1959_p11), %s2385_s5, 1024, %s1963_s13, [#allocation6], %s1822_s26, %s1822_s26, %s1823_s24  }
  0x49   : > { %s1609_s16 = scalar_lea.hbm %s2387_s7, 1024 }
  0x4a   : > { %p1610_p6 = scmp.ne.s32.totalorder %s2387_s7, %s1609_s16  ;;  %p1616_p5 = scmp.lt.u32.totalorder %s1609_s16, %s2387_s7 }
  0x4c   : > { %p1612_p10 = pnand %p1610_p6, %p1975_p13 }
  0x4e   : > { %p1613_p3 = pneg %p1612_p10 }
  0x50   : > { %p1618_p7 = pnand %p1616_p5, %p1613_p3 }
  0x52   : > { %1621 = shalt.err (!%p1618_p7)
}
  0x53   : > { %s1622_s29 = scalar_lea.vmem %s381_s15, 1024  ;;  %p1630_p1 = scmp.lt.s32.totalorder %s381_s15, %s381_s15 }
  0x54   : > { %p1623_p9 = scmp.ne.s32.totalorder %s381_s15, %s1622_s29  ;;  %p1631_p2 = scmp.lt.s32.totalorder %s1622_s29, %s1622_s29 }
  0x56   : > { %p1625_p12 = pnand %p1623_p9, %p1975_p13  ;;  %p1632_p4 = por %p1631_p2, %p1630_p1 }
  0x58   : > { %p1626_p0 = pneg %p1625_p12 }
  0x5a   : > { %p1633_p8 = pnand %p1632_p4, %p1626_p0 }
  0x5c   : > { %1636 = shalt.err (!%p1633_p8)
}
  0x5d   : > { %1441 = dma.hbm_to_vmem [thread:$0]  (!%p1959_p11), %s2387_s7, 1024, %s381_s15, [#allocation9], %s1822_s26, %s1822_s26, %s1823_s24  }
  0x5e   : > { %s54_s11 = sadd.s32 1, %s1805_s19  ;;  %s45_s30 = sadd.s32 1, %s1813_s21 }
  0x5f   : > { %p61_p4 = scmp.ne.s32.totalorder %s1805_s19, %s1801_s18  ;;  %p47_p8 = scmp.ge.s32.totalorder %s45_s30, 2 }
  0x60   : > { %p62_p13 = scmp.eq.s32.totalorder %s1817_s22, 0  ;;  %p2418_p6 = scmp.eq.s32.totalorder %s1927_s23, 1 }
  0x61   : > { %p1459_p3 = scmp.lt.s32.totalorder %s1817_s22, 2  ;;  %s2447_s30 = smov (%p47_p8, %s45_s30), 0 }
  0x62   : > { %p2054_p10 = por %p2418_p6, %p61_p4  ;;  %p63_p5 = por %p62_p13, %p61_p4 }
  0x63   : > { %s397_s10 = sand.u32 1, %s1805_s19   ;;  %s49_s20 = ssub.s32 %s1813_s21, %s2447_s30 }
  0x64   : > { %p52_p7 = scmp.eq.s32.totalorder %s49_s20, 0  ;;  %s1240_s15 = sshll.u32 %s397_s10, 4 }
  0x65   : > { %s1315_s26 = sshll.u32 %s1813_s21, 8  ;;  %s2420_s0 = sld [smem:[#allocation22_spill]] }
  0x66   : > { %s2066_s24 = scalar_select %p52_p7, %s1805_s19, %s54_s11  }
  0x67   : > { %s401_s14 = scalar_lea.vmem [#allocation2], %s1240_s15  ;;  %p2077_p11 = pnand %p1459_p3, %p63_p5 }
  0x68   : > { %s410_s17 = sshll.u32 %s401_s14, 4  ;;  %s2081_s13 = scalar_lea.sflag [#allocation3], %s397_s10  ;;  %s2073_s17 = int_to_ptr.vmem [resolvable:$true] %s410_s17 }
  0x69   : > { %p1639_p12 = pneg %p2077_p11 }
  0x6b   : > { %s2071_s12 = scalar_lea.hbm %s2420_s0, %s1315_s26  ;;  %s1642_s15 = scalar_lea.hbm %s2420_s0, 512 }
  0x6c   : > { %s1637_s8 = scalar_lea.hbm %s2071_s12, 256  ;;  %p1643_p2 = scmp.lt.u32.totalorder %s2071_s12, %s2420_s0 }
  0x6d   : > { %p1638_p9 = scmp.ne.s32.totalorder %s2071_s12, %s1637_s8  ;;  %p1644_p4 = scmp.lt.u32.totalorder %s1642_s15, %s1637_s8 }
  0x6e   : > { %p1646_p13 = scmp.lt.u32.totalorder %s1637_s8, %s2071_s12 }
  0x6f   : > { %p1640_p0 = pnand %p1639_p12, %p1638_p9  ;;  %p1645_p8 = por %p1644_p4, %p1643_p2 }
  0x71   : > { %p1641_p1 = pneg %p1640_p0  ;;  %p1647_p6 = por %p1646_p13, %p1645_p8 }
  0x73   : > { %p1648_p3 = pnand %p1647_p6, %p1641_p1 }
  0x75   : > { %1651 = shalt.err (!%p1648_p3)
}
  0x76   : > { %s1652_s10 = scalar_lea.vmem %s2073_s17, 256  ;;  %s1824_s28 = smov [#allocation2]  }
  0x77   : > { %p1653_p5 = scmp.ne.s32.totalorder %s2073_s17, %s1652_s10  ;;  %s1657_s14 = sshll.u32 %s1824_s28, 4  ;;  %s1658_s14 = int_to_ptr.vmem [resolvable:$false] %s1657_s14 }
  0x78   : > { %s1659_s11 = scalar_lea.vmem %s1658_s14, 512  ;;  %p1660_p0 = scmp.lt.s32.totalorder %s2073_s17, %s1658_s14 }
  0x79   : > { %p1655_p7 = pnand %p1653_p5, %p1639_p12  ;;  %p1661_p2 = scmp.lt.s32.totalorder %s1659_s11, %s1652_s10 }
  0x7b   : > { %p1656_p9 = pneg %p1655_p7  ;;  %p1662_p4 = por %p1661_p2, %p1660_p0 }
  0x7d   : > { %p1663_p8 = pnand %p1662_p4, %p1656_p9 }
  0x7f   : > { %1666 = shalt.err (!%p1663_p8)
}
  0x80   : > { %s1825_s8 = smov 128   ;;  %s1826_s20 = smov 8  }
  0x81   : > { %1445 = dma.hbm_to_vmem [thread:$0]  (!%p2077_p11), %s2071_s12, 256, %s2073_s17, %s2081_s13, %s1825_s8, %s1825_s8, %s1826_s20  }
  0x82   : > { %p2422_p12 = scmp.ne.s32.totalorder %s2415_s27, 0 }
  0x83   : > { %s2112_s15 = sand.u32 (!%p2422_p12), 1, %s1801_s18   ;;  %p2423_p1 = scmp.ne.s32.totalorder (!%p2422_p12), %s2412_s25, 0 }
  0x84   : > { %422 = sbr.rel (%p2422_p12) target bundleno = 872 (0x368), region = 56  ;;  %s1244_s26 = sshll.u32 (!%p2422_p12), %s2112_s15, 4 }
  0x85   : > { %s425_s16 = scalar_lea.sflag (!%p2422_p12), [#allocation3], %s2112_s15  ;;  %s428_s10 = scalar_lea.vmem (!%p2422_p12), [#allocation2], %s1244_s26 }
  0x8b   : > { %1776 = dma.done.wait (%p2423_p1), %s425_s16, 256  }
  0x8c   : > { %1778 = vsyncadd (%p2423_p1), %s425_s16, 4294967040  ;;  %p2424_p13 = scmp.eq.s32.totalorder %s1927_s23, 0 }
  0x8e   : > { %1780 = dma.done.wait (%p2424_p13), [#allocation6], 2048   ;;  %p2425_p11 = pmov %p2424_p13 }
  0x90   : > { %1782 = vsyncadd (%p2425_p11), [#allocation6], 4294965248  ;;  %p2426_p6 = pmov %p2425_p11 }
  0x92   : > { %1784 = dma.done.wait (%p2426_p6), [#allocation9], 1024   ;;  %p2427_p3 = pmov %p2426_p6 }
  0x93   : > { %v494_v0 = vld [vmem:[%s428_s10] sm:$0xff]  ;;  %v495_v1 = vld [vmem:[%s428_s10 + $0x8] sm:$0xff]  ;;  %v1827_v4 = vmov 0.0   ;;  %vm1828_vm0 = vmmov 0   ;;  %s2165_s29 = sshll.u32 %s2112_s15, 5  ;;  %vm886_vm1 = vcmask 257024  }
  0x94   : > { %1786 = vsyncadd (%p2427_p3), [#allocation9], 4294966272  ;;  %498 = vadd.xlane.f32.xlu0 %v494_v0  ;;  %v1525_v2 = vld [vmem:[#allocation5] sm:$0xff]   ;;  %1352 = vmatprep.subr.bf16.mxu0 %v1827_v4  ;;  %v1527_v5 = vld [vmem:[#allocation5 + $0x8] sm:$0xff]   ;;  %s2174_s8 = scalar_lea.vmem [#allocation11], %s2165_s29  ;;  %s2401_s20 = smov 64  }
  0x95   : > { %v1526_v3 = vld [vmem:[#allocation7] sm:$0xff]   ;;  %1372 = vmatprep.subr.bf16.mxu1 %v1827_v4  ;;  %1353 = vmatpush3.bf16.msra.mxu0 %v1525_v2  ;;  %v1528_v14 = vld [vmem:[#allocation7 + $0x8] sm:$0xff]   ;;  %v1529_v15 = vld [vmem:[#allocation5 + $0x10] sm:$0xff]   ;;  %s1830_s26 = smov 96   ;;  %s2181_s16 = scalar_lea.vmem [#allocation10], %s2165_s29 }
  0x96   : > { %1373 = vmatpush3.bf16.msra.mxu1 %v1526_v3  ;;  %1354 = vmatprep.subr.bf16.mxu0 %v1827_v4  ;;  %v1530_v16 = vld [vmem:[#allocation7 + $0x10] sm:$0xff]   ;;  %v1531_v17 = vld [vmem:[#allocation5 + $0x18] sm:$0xff]   ;;  %v1533_v19 = vld [vmem:[#allocation5 + $0x20] sm:$0xff]   ;;  %s1831_s10 = smov 32   ;;  %s2428_s12 = sld [smem:[#allocation23_spill]] }
  0x97   : > { %1374 = vmatprep.subr.bf16.mxu1 %v1827_v4  ;;  %v1532_v18 = vld [vmem:[#allocation7 + $0x18] sm:$0xff]   ;;  %v1534_v20 = vld [vmem:[#allocation7 + $0x20] sm:$0xff]   ;;  %1368 = vmatprep.mubr.msk.bf16.mxu0 %vm1828_vm0, %v1827_v4  ;;  %v1535_v21 = vld [vmem:[#allocation5 + $0x28] sm:$0xff]   ;;  %s2199_s17 = scalar_lea.vmem [#allocation13], %s2165_s29  ;;  %s2429_s13 = sld [smem:[#allocation20_spill]] }
  0x98   : > { %500 = vadd.xlane.f32.xlu0 %v495_v1  ;;  %1388 = vmatprep.mubr.msk.bf16.mxu1 %vm1828_vm0, %v1827_v4  ;;  %v1536_v22 = vld [vmem:[#allocation7 + $0x28] sm:$0xff]   ;;  %v1537_v23 = vld [vmem:[#allocation5 + $0x30] sm:$0xff]   ;;  %v1539_v25 = vld [vmem:[#allocation5 + $0x38] sm:$0xff]   ;;  %s993_s29 = sand.u32 1, %s1927_s23   ;;  %s1032_s14 = sshll.u32 %s2174_s8, 4  ;;  %s2232_s14 = int_to_ptr.vmem [resolvable:$true] %s1032_s14 }
  0x99   : > { %1355 = vmatpush3.bf16.msra.mxu0 %v1527_v5  ;;  %v1538_v24 = vld [vmem:[#allocation7 + $0x30] sm:$0xff]   ;;  %v1540_v26 = vld [vmem:[#allocation7 + $0x38] sm:$0xff]   ;;  %v1251_v35 = vld [vmem:[%s2381_s1] ss:$0 sm:$0xff]  ;;  %s2238_s23 = scalar_lea.sflag [#allocation12], %s993_s29  ;;  %s1667_s27 = scalar_lea.vmem %s2232_s14, 512 }
  0x9a   : > { %1356 = vmatprep.subr.bf16.mxu0 %v1827_v4  ;;  %1375 = vmatpush3.bf16.msra.mxu1 %v1528_v14  ;;  %v1252_v39 = vld [vmem:[%s2382_s2] ss:$0 sm:$0xff]  ;;  %v1542_v45 = vld [vmem:[#allocation8 + $0x8] sm:$0xff]   ;;  %v1543_v46 = vld [vmem:[#allocation8 + $0x10] sm:$0xff]   ;;  %p1668_p5 = scmp.ne.s32.totalorder %s2232_s14, %s1667_s27 }
  0x9b   : > { %1376 = vmatprep.subr.bf16.mxu1 %v1827_v4  ;;  %v1541_v43 = vld [vmem:[#allocation8] sm:$0xff]   ;;  %v1544_v47 = vld [vmem:[#allocation8 + $0x18] sm:$0xff]   ;;  %v1546_v49 = vld [vmem:[#allocation8 + $0x28] sm:$0xff]  }
  0x9c   : > { %v1545_v48 = vld [vmem:[#allocation8 + $0x20] sm:$0xff]   ;;  %v1547_v50 = vld [vmem:[#allocation8 + $0x30] sm:$0xff]   ;;  %v1548_v51 = vld [vmem:[#allocation8 + $0x38] sm:$0xff]   ;;  %p1669_p7 = pnand %p1668_p5, %p2054_p10 }
  0x9d   : > { %1357 = vmatpush3.bf16.msra.mxu0 %v1529_v15  ;;  %v1253_v52 = vld [vmem:[%s2384_s4] ss:$0 sm:$0xff]  ;;  %s2219_s28 = sshll.u32 %s2429_s13, 9 }
  0x9e   : > { %1377 = vmatpush3.bf16.msra.mxu1 %v1530_v16  ;;  %1358 = vmatprep.subr.bf16.mxu0 %v1827_v4  ;;  %v1262_v53 = vld [vmem:[%s2386_s6] ss:$0 sm:$0xff]  ;;  %p1670_p9 = pneg %p1669_p7 }
  0x9f   : > { %1378 = vmatprep.subr.bf16.mxu1 %v1827_v4 }
  0xa1   : > { %1359 = vmatpush3.bf16.msra.mxu0 %v1531_v17 }
  0xa2   : > { %1379 = vmatpush3.bf16.msra.mxu1 %v1532_v18  ;;  %1360 = vmatprep.subr.bf16.mxu0 %v1827_v4 }
  0xa3   : > { %1380 = vmatprep.subr.bf16.mxu1 %v1827_v4 }
  0xa5   : > { %1361 = vmatpush3.bf16.msra.mxu0 %v1533_v19 }
  0xa6   : > { %1381 = vmatpush3.bf16.msra.mxu1 %v1534_v20  ;;  %1362 = vmatprep.subr.bf16.mxu0 %v1827_v4 }
  0xa7   : > { %1382 = vmatprep.subr.bf16.mxu1 %v1827_v4 }
  0xa9   : > { %1363 = vmatpush3.bf16.msra.mxu0 %v1535_v21 }
  0xaa   : > { %1383 = vmatpush3.bf16.msra.mxu1 %v1536_v22  ;;  %1364 = vmatprep.subr.bf16.mxu0 %v1827_v4 }
  0xab   : > { %1384 = vmatprep.subr.bf16.mxu1 %v1827_v4 }
  0xad   : > { %1365 = vmatpush3.bf16.msra.mxu0 %v1537_v23 }
  0xae   : > { %1385 = vmatpush3.bf16.msra.mxu1 %v1538_v24  ;;  %1366 = vmatprep.subr.bf16.mxu0 %v1827_v4 }
  0xaf   : > { %1386 = vmatprep.subr.bf16.mxu1 %v1827_v4 }
  0xb1   : > { %1367 = vmatpush3.bf16.msra.mxu0 %v1539_v25 }
  0xb2   : > { %1387 = vmatpush3.bf16.msra.mxu1 %v1540_v26  ;;  %1392 = vmatprep.subr.bf16.mxu0 %v1827_v4 }
 0x121   : > { %v499_v6 = vpop.xlane.xlu0 %498 }
 0x122   : > { %v503_v7 = vmul.f32 0.0078125, %v499_v6 }
 0x124   : > { %v505_v8 = vsub.f32 %v494_v0, %v503_v7 }
 0x125   : > { %v501_v9 = vpop.xlane.xlu0 %500 }
 0x126   : > { %v504_v10 = vmul.f32 0.0078125, %v501_v9  ;;  %v507_v11 = vmul.f32 %v505_v8, %v505_v8 }
 0x128   : > { %v506_v12 = vsub.f32 %v495_v1, %v504_v10  ;;  %509 = vadd.xlane.f32.xlu1 %v507_v11 }
 0x12a   : > { %v508_v13 = vmul.f32 %v506_v12, %v506_v12 }
 0x12c   : > { %511 = vadd.xlane.f32.xlu1 %v508_v13 }
 0x1b5   : > { %v510_v27 = vpop.xlane.xlu1 %509 }
 0x1b6   : > { %v513_v28 = vmul.f32 0.0078125, %v510_v27 }
 0x1b8   : > { %v515_v29 = vadd.f32 1e-05, %v513_v28 }
 0x1b9   : > { %v512_v30 = vpop.xlane.xlu1 %511 }
 0x1ba   : > { %1549 = vrsqrt.f32 %v515_v29  ;;  %v514_v31 = vmul.f32 0.0078125, %v512_v30 }
 0x1bc   : > { %v516_v32 = vadd.f32 1e-05, %v514_v31 }
 0x1be   : > { %1551 = vrsqrt.f32 %v516_v32 }
 0x1c4   : > { %v1550_v33 = vpop.eup %1549 }
 0x1c5   : > { %v519_v34 = vmul.f32 %v1550_v33, %v505_v8  ;;  %v1271_v8 = vld [vmem:[%s2428_s12] ss:$0 sm:$0xff]  ;;  %s1832_s12 = smov [#allocation11]  }
 0x1c6   : > { %s1671_s13 = sshll.u32 %s1832_s12, 4  ;;  %s1672_s13 = int_to_ptr.vmem [resolvable:$false] %s1671_s13 }
 0x1c7   : > { %v527_v38 = vmul.f32 %v1251_v35, %v519_v34  ;;  %s1673_s11 = scalar_lea.vmem %s1672_s13, 1024  ;;  %p1674_p0 = scmp.lt.s32.totalorder %s2232_s14, %s1672_s13 }
 0x1c8   : > { %v1552_v36 = vpop.eup %1551  ;;  %p1675_p2 = scmp.lt.s32.totalorder %s1673_s11, %s1667_s27 }
 0x1c9   : > { %v520_v37 = vmul.f32 %v1552_v36, %v506_v12  ;;  %v535_v41 = vadd.f32 %v1252_v39, %v527_v38 }
 0x1ca   : > { %p1676_p4 = por %p1675_p2, %p1674_p0 }
 0x1cb   : > { %v528_v40 = vmul.f32 %v1251_v35, %v520_v37 }
 0x1cc   : > { %p1677_p8 = pnand %p1676_p4, %p1670_p9 }
 0x1cd   : > { %v536_v42 = vadd.f32 %v1252_v39, %v528_v40 }
 0x1cf   : > { %v537_v44 = vpack.c.bf16 %v536_v42, %v535_v41 }
 0x1d1   : > { %1369 = vmatmul.mubr.bf16.vlgmr.msra.gmra.mrb[0].mxu0 %v537_v44  ;;  %1389 = vmatmul.mubr.bf16.vlgmr.msra.gmra.mrb[0].mxu1 %v537_v44 }
 0x1d2   : > { %1393 = vmatpush3.bf16.msra.mxu0 %v1541_v43  ;;  %1408 = vmatprep.mubr.msk.bf16.mxu0 %vm1828_vm0, %v1827_v4 }
 0x1d3   : > { %1394 = vmatprep.subr.bf16.mxu0 %v1827_v4 }
 0x1d6   : > { %1395 = vmatpush3.bf16.msra.mxu0 %v1542_v45 }
 0x1d7   : > { %1396 = vmatprep.subr.bf16.mxu0 %v1827_v4 }
 0x1da   : > { %1397 = vmatpush3.bf16.msra.mxu0 %v1543_v46 }
 0x1db   : > { %1398 = vmatprep.subr.bf16.mxu0 %v1827_v4 }
 0x1de   : > { %1399 = vmatpush3.bf16.msra.mxu0 %v1544_v47 }
 0x1df   : > { %1400 = vmatprep.subr.bf16.mxu0 %v1827_v4 }
 0x1e2   : > { %1401 = vmatpush3.bf16.msra.mxu0 %v1545_v48 }
 0x1e3   : > { %1402 = vmatprep.subr.bf16.mxu0 %v1827_v4 }
 0x1e6   : > { %1403 = vmatpush3.bf16.msra.mxu0 %v1546_v49 }
 0x1e7   : > { %1404 = vmatprep.subr.bf16.mxu0 %v1827_v4 }
 0x1ea   : > { %1405 = vmatpush3.bf16.msra.mxu0 %v1547_v50 }
 0x1eb   : > { %1406 = vmatprep.subr.bf16.mxu0 %v1827_v4 }
 0x1ee   : > { %1407 = vmatpush3.bf16.msra.mxu0 %v1548_v51 }
 0x1f1   : > { %1409 = vmatmul.mubr.bf16.vlgmr.msra.gmra.mrb[4].mxu0 %v537_v44 }
 0x2a4   : > { %v643_v54 = vpop.f32.mrb[0].mxu0  ;;  %v757_v55 = vpop.f32.mrb[0].mxu1 }
 0x2a5   : > { %v644_v56 = vadd.f32 %v1253_v52, %v643_v54  ;;  %v758_v57 = vadd.f32 %v1262_v53, %v757_v55  ;;  %v1370_v58 = vpop.f32.mrb[1].mxu0  ;;  %v1390_v59 = vpop.f32.mrb[1].mxu1 }
 0x2a6   : > { %v646_v60 = vpop.f32.mrb[2].mxu0  ;;  %v760_v61 = vpop.f32.mrb[2].mxu1 }
 0x2a7   : > { %v650_v62 = vmul.f32 0.17677669, %v644_v56  ;;  %v1318_v63 = vpack.c.bf16 %v758_v57, %v758_v57  ;;  %v647_v0 = vadd.f32 %v1253_v52, %v646_v60  ;;  %v761_v1 = vadd.f32 %v1262_v53, %v760_v61  ;;  %v1371_v2 = vpop.f32.mrb[3].mxu0  ;;  %v1391_v3 = vpop.f32.mrb[3].mxu1 }
 0x2a9   : > { %v1316_v4 = vpack.c.bf16 %v650_v62, %v650_v62  ;;  %896 = vst.msk [vmem:[%s2174_s8] sm:$0xf] %vm886_vm1, %v1318_v63  ;;  %v651_v5 = vmul.f32 0.17677669, %v647_v0  ;;  %v1319_v6 = vpack.c.bf16 %v761_v1, %v761_v1  ;;  %943 = vrot.lane.b32.xlu1 %v1318_v63, %s2401_s20  ;;  %916 = vrot.lane.b32.xlu0 %v1318_v63, %s1830_s26 }
 0x2ab   : > { %887 = vst.msk [vmem:[%s2181_s16] sm:$0xf] %vm886_vm1, %v1316_v4  ;;  %v1317_v7 = vpack.c.bf16 %v651_v5, %v651_v5  ;;  %897 = vst.msk [vmem:[%s2174_s8 + $0x4] sm:$0xf] %vm886_vm1, %v1319_v6 }
 0x2ad   : > { %888 = vst.msk [vmem:[%s2181_s16 + $0x4] sm:$0xf] %vm886_vm1, %v1317_v7  ;;  %970 = vrot.lane.b32.xlu0 %v1318_v63, %s1831_s10  ;;  %918 = vrot.lane.b32.xlu1 %v1319_v6, %s1830_s26 }
 0x2b1   : > { %945 = vrot.lane.b32.xlu1 %v1319_v6, %s2401_s20  ;;  %907 = vrot.lane.b32.xlu0 %v1316_v4, %s1830_s26 }
 0x2b5   : > { %972 = vrot.lane.b32.xlu1 %v1319_v6, %s1831_s10  ;;  %934 = vrot.lane.b32.xlu0 %v1316_v4, %s2401_s20 }
 0x2b9   : > { %961 = vrot.lane.b32.xlu0 %v1316_v4, %s1831_s10  ;;  %909 = vrot.lane.b32.xlu1 %v1317_v7, %s1830_s26 }
 0x2bd   : > { %936 = vrot.lane.b32.xlu1 %v1317_v7, %s2401_s20 }
 0x2c1   : > { %963 = vrot.lane.b32.xlu1 %v1317_v7, %s1831_s10 }
 0x2c4   : > { %v869_v9 = vpop.f32.mrb[4].mxu0 }
 0x2c5   : > { %v870_v10 = vadd.f32 %v1271_v8, %v869_v9  ;;  %v1410_v11 = vpop.f32.mrb[5].mxu0 }
 0x2c6   : > { %v872_v12 = vpop.f32.mrb[6].mxu0 }
 0x2c7   : > { %v1320_v13 = vpack.c.bf16 %v870_v10, %v870_v10  ;;  %v873_v14 = vadd.f32 %v1271_v8, %v872_v12  ;;  %v1411_v15 = vpop.f32.mrb[7].mxu0 }
 0x2c9   : > { %905 = vst.msk [vmem:[%s2199_s17] sm:$0xf] %vm886_vm1, %v1320_v13  ;;  %v1321_v16 = vpack.c.bf16 %v873_v14, %v873_v14  ;;  %925 = vrot.lane.b32.xlu0 %v1320_v13, %s1830_s26 }
 0x2cb   : > { %906 = vst.msk [vmem:[%s2199_s17 + $0x4] sm:$0xf] %vm886_vm1, %v1321_v16  ;;  %927 = vrot.lane.b32.xlu1 %v1321_v16, %s1830_s26 }
 0x2cd   : > { %952 = vrot.lane.b32.xlu0 %v1320_v13, %s2401_s20 }
 0x2cf   : > { %954 = vrot.lane.b32.xlu1 %v1321_v16, %s2401_s20 }
 0x2d1   : > { %979 = vrot.lane.b32.xlu0 %v1320_v13, %s1831_s10 }
 0x2d3   : > { %981 = vrot.lane.b32.xlu1 %v1321_v16, %s1831_s10  ;;  %s2430_s10 = sld [smem:[#allocation25_spill]] }
 0x2d9   : > { %s2230_s25 = scalar_lea.hbm %s2430_s10, %s2219_s28 }
 0x31b   : > { %v944_v17 = vpop.permute.xlu1 %943  ;;  %v917_v18 = vpop.permute.xlu0 %916 }
 0x31c   : > { %1294 = vst.msk [vmem:[%s2174_s8 + $0x10] sm:$0xf] %vm886_vm1, %v944_v17  ;;  %1288 = vst.msk [vmem:[%s2174_s8 + $0x8] sm:$0xf] %vm886_vm1, %v917_v18 }
 0x31f   : > { %v971_v19 = vpop.permute.xlu0 %970  ;;  %v919_v20 = vpop.permute.xlu1 %918 }
 0x320   : > { %1300 = vst.msk [vmem:[%s2174_s8 + $0x18] sm:$0xf] %vm886_vm1, %v971_v19  ;;  %1289 = vst.msk [vmem:[%s2174_s8 + $0xc] sm:$0xf] %vm886_vm1, %v919_v20 }
 0x323   : > { %v946_v21 = vpop.permute.xlu1 %945  ;;  %v908_v22 = vpop.permute.xlu0 %907 }
 0x324   : > { %1295 = vst.msk [vmem:[%s2174_s8 + $0x14] sm:$0xf] %vm886_vm1, %v946_v21  ;;  %1286 = vst.msk [vmem:[%s2181_s16 + $0x8] sm:$0xf] %vm886_vm1, %v908_v22 }
 0x327   : > { %v973_v23 = vpop.permute.xlu1 %972  ;;  %v935_v24 = vpop.permute.xlu0 %934 }
 0x328   : > { %1301 = vst.msk [vmem:[%s2174_s8 + $0x1c] sm:$0xf] %vm886_vm1, %v973_v23  ;;  %1292 = vst.msk [vmem:[%s2181_s16 + $0x10] sm:$0xf] %vm886_vm1, %v935_v24 }
 0x329   : > { %1680 = shalt.err (!%p1677_p8)
}
 0x32a   : > { %s1681_s8 = scalar_lea.hbm %s2230_s25, 512  ;;  %s1685_s12 = scalar_lea.hbm %s2430_s10, 1024 }
 0x32b   : > { %p1682_p12 = scmp.ne.s32.totalorder %s2230_s25, %s1681_s8  ;;  %p1686_p11 = scmp.lt.u32.totalorder %s2230_s25, %s2430_s10 }
 0x32c   : > { %p1687_p6 = scmp.lt.u32.totalorder %s1685_s12, %s1681_s8  ;;  %p1689_p5 = scmp.lt.u32.totalorder %s1681_s8, %s2230_s25 }
 0x32d   : > { %p1683_p1 = pnand %p1682_p12, %p2054_p10 }
 0x32e   : > { %p1688_p3 = por %p1687_p6, %p1686_p11 }
 0x32f   : > { %p1684_p13 = pneg %p1683_p1 }
 0x330   : > { %p1690_p7 = por %p1689_p5, %p1688_p3 }
 0x332   : > { %p1691_p9 = pnand %p1690_p7, %p1684_p13 }
 0x334   : > { %1694 = shalt.err (!%p1691_p9)
}
 0x335   : > { %s2403_s27 = smov 4   ;;  %s2431_s11 = smov 64   ;;  %v962_v25 = vpop.permute.xlu0 %961  ;;  %v910_v26 = vpop.permute.xlu1 %909 }
 0x336   : > { %1427 = dma.vmem_to_hbm [thread:$0]  (%p2054_p10), %s2232_s14, 512, %s2230_s25, %s2238_s23, %s2431_s11, %s2431_s11, %s2403_s27  }
 0x337   : > { %1298 = vst.msk [vmem:[%s2181_s16 + $0x18] sm:$0xf] %vm886_vm1, %v962_v25  ;;  %1287 = vst.msk [vmem:[%s2181_s16 + $0xc] sm:$0xf] %vm886_vm1, %v910_v26  ;;  %s1014_s20 = sshll.u32 %s2181_s16, 4  ;;  %s2432_s26 = sld [smem:[#allocation24_spill]]  ;;  %s2278_s20 = int_to_ptr.vmem [resolvable:$true] %s1014_s20 }
 0x338   : > { %s1695_s25 = scalar_lea.vmem %s2278_s20, 512  ;;  %s1834_s13 = smov [#allocation10]  }
 0x339   : > { %v937_v27 = vpop.permute.xlu1 %936  ;;  %p1696_p0 = scmp.ne.s32.totalorder %s2278_s20, %s1695_s25  ;;  %s1699_s27 = sshll.u32 %s1834_s13, 4  ;;  %s1700_s27 = int_to_ptr.vmem [resolvable:$false] %s1699_s27 }
 0x33a   : > { %1293 = vst.msk [vmem:[%s2181_s16 + $0x14] sm:$0xf] %vm886_vm1, %v937_v27  ;;  %s1701_s8 = scalar_lea.vmem %s1700_s27, 1024  ;;  %p1702_p8 = scmp.lt.s32.totalorder %s2278_s20, %s1700_s27 }
 0x33b   : > { %p1697_p2 = pnand %p1696_p0, %p2054_p10  ;;  %p1703_p12 = scmp.lt.s32.totalorder %s1701_s8, %s1695_s25 }
 0x33d   : > { %s2276_s12 = scalar_lea.hbm %s2432_s26, %s2219_s28  ;;  %v964_v28 = vpop.permute.xlu1 %963  ;;  %p1698_p4 = pneg %p1697_p2 }
 0x33e   : > { %1299 = vst.msk [vmem:[%s2181_s16 + $0x1c] sm:$0xf] %vm886_vm1, %v964_v28  ;;  %p1704_p1 = por %p1703_p12, %p1702_p8 }
 0x340   : > { %p1705_p13 = pnand %p1704_p1, %p1698_p4 }
 0x342   : > { %1708 = shalt.err (!%p1705_p13)
}
 0x343   : > { %s1709_s16 = scalar_lea.hbm %s2276_s12, 512  ;;  %s1713_s13 = scalar_lea.hbm %s2432_s26, 1024 }
 0x344   : > { %p1710_p11 = scmp.ne.s32.totalorder %s2276_s12, %s1709_s16  ;;  %p1714_p5 = scmp.lt.u32.totalorder %s2276_s12, %s2432_s26 }
 0x345   : > { %p1715_p7 = scmp.lt.u32.totalorder %s1713_s13, %s1709_s16  ;;  %p1717_p0 = scmp.lt.u32.totalorder %s1709_s16, %s2276_s12 }
 0x346   : > { %p1711_p6 = pnand %p1710_p11, %p2054_p10 }
 0x347   : > { %p1716_p9 = por %p1715_p7, %p1714_p5 }
 0x348   : > { %p1712_p3 = pneg %p1711_p6 }
 0x349   : > { %p1718_p2 = por %p1717_p0, %p1716_p9 }
 0x34b   : > { %p1719_p4 = pnand %p1718_p2, %p1712_p3 }
 0x34d   : > { %1722 = shalt.err (!%p1719_p4)
}
 0x34e   : > { %s2433_s25 = smov 4   ;;  %s2434_s8 = scalar_lea.sflag [#allocation4], %s2112_s15  ;;  %v926_v29 = vpop.permute.xlu0 %925  ;;  %v928_v30 = vpop.permute.xlu1 %927 }
 0x34f   : > { %1426 = dma.vmem_to_hbm [thread:$0]  (%p2054_p10), %s2278_s20, 512, %s2276_s12, %s2434_s8, %s2431_s11, %s2431_s11, %s2433_s25  }
 0x350   : > { %1290 = vst.msk [vmem:[%s2199_s17 + $0x8] sm:$0xf] %vm886_vm1, %v926_v29  ;;  %1291 = vst.msk [vmem:[%s2199_s17 + $0xc] sm:$0xf] %vm886_vm1, %v928_v30  ;;  %s1050_s0 = sshll.u32 %s2199_s17, 4  ;;  %s2435_s12 = sld [smem:[#allocation26_spill]]  ;;  %s2318_s0 = int_to_ptr.vmem [resolvable:$true] %s1050_s0 }
 0x351   : > { %s1723_s16 = scalar_lea.vmem %s2318_s0, 512  ;;  %s1835_s29 = smov [#allocation13]  }
 0x352   : > { %v953_v31 = vpop.permute.xlu0 %952  ;;  %v955_v32 = vpop.permute.xlu1 %954  ;;  %p1724_p8 = scmp.ne.s32.totalorder %s2318_s0, %s1723_s16  ;;  %s1727_s13 = sshll.u32 %s1835_s29, 4  ;;  %s1728_s13 = int_to_ptr.vmem [resolvable:$false] %s1727_s13 }
 0x353   : > { %1296 = vst.msk [vmem:[%s2199_s17 + $0x10] sm:$0xf] %vm886_vm1, %v953_v31  ;;  %1297 = vst.msk [vmem:[%s2199_s17 + $0x14] sm:$0xf] %vm886_vm1, %v955_v32  ;;  %s1729_s27 = scalar_lea.vmem %s1728_s13, 1024  ;;  %p1730_p13 = scmp.lt.s32.totalorder %s2318_s0, %s1728_s13 }
 0x354   : > { %p1725_p12 = pnand %p1724_p8, %p2054_p10  ;;  %p1731_p11 = scmp.lt.s32.totalorder %s1729_s27, %s1723_s16 }
 0x356   : > { %v980_v33 = vpop.permute.xlu0 %979  ;;  %s2326_s14 = scalar_lea.hbm %s2435_s12, %s2219_s28  ;;  %v982_v34 = vpop.permute.xlu1 %981  ;;  %p1726_p1 = pneg %p1725_p12 }
 0x357   : > { %1302 = vst.msk [vmem:[%s2199_s17 + $0x18] sm:$0xf] %vm886_vm1, %v980_v33  ;;  %1303 = vst.msk [vmem:[%s2199_s17 + $0x1c] sm:$0xf] %vm886_vm1, %v982_v34  ;;  %p1732_p6 = por %p1731_p11, %p1730_p13 }
 0x359   : > { %p1733_p3 = pnand %p1732_p6, %p1726_p1 }
 0x35b   : > { %1736 = shalt.err (!%p1733_p3)
}
 0x35c   : > { %s1737_s17 = scalar_lea.hbm %s2326_s14, 512  ;;  %s1741_s15 = scalar_lea.hbm %s2435_s12, 1024 }
 0x35d   : > { %p1738_p5 = scmp.ne.s32.totalorder %s2326_s14, %s1737_s17  ;;  %p1742_p0 = scmp.lt.u32.totalorder %s2326_s14, %s2435_s12 }
 0x35e   : > { %p1743_p2 = scmp.lt.u32.totalorder %s1741_s15, %s1737_s17  ;;  %p1745_p8 = scmp.lt.u32.totalorder %s1737_s17, %s2326_s14 }
 0x35f   : > { %p1739_p7 = pnand %p1738_p5, %p2054_p10 }
 0x360   : > { %p1744_p4 = por %p1743_p2, %p1742_p0 }
 0x361   : > { %p1740_p9 = pneg %p1739_p7 }
 0x362   : > { %p1746_p12 = por %p1745_p8, %p1744_p4 }
 0x364   : > { %p1747_p1 = pnand %p1746_p12, %p1740_p9 }
 0x366   : > { %1750 = shalt.err (!%p1747_p1)
}
 0x367   : > { %1428 = dma.vmem_to_hbm [thread:$0]  (%p2054_p10), %s2318_s0, 512, %s2326_s14, %s2238_s23, %s2431_s11, %s2431_s11, %s2433_s25  }
 0x368 PF: > { %s2436_s16 = sld [smem:[#allocation19_spill]]  ;;  %s2437_s13 = sld [smem:[#allocation21_spill]] }
 0x369   : > { %p2439_p11 = scmp.ge.s32.totalorder %s1817_s22, 2 }
 0x36e   : > { %s1065_s27 = sand.u32 1, %s2436_s16   ;;  %p2438_p13 = scmp.ne.s32.totalorder %s2437_s13, 0 }
 0x36f   : > { %s1066_s17 = scalar_lea.sflag [#allocation4], %s1065_s27 }
 0x370   : > { %p1447_p6 = pnand %p2439_p11, %p2438_p13 }
 0x372   : > { %1788 = dma.done.wait (!%p1447_p6), %s1066_s17, 512  }
 0x373   : > { %1790 = vsyncadd (!%p1447_p6), %s1066_s17, 4294966784  ;;  %s2440_s9 = sadd.s32 4294967294, %s1817_s22  }
 0x374   : > { %s1074_s28 = sand.u32 1, %s2440_s9  }
 0x375   : > { %s1075_s8 = scalar_lea.sflag [#allocation12], %s1074_s28 }
 0x376   : > { %1792 = dma.done.wait (!%p1447_p6), %s1075_s8, 1024  }
 0x377   : > { %1794 = vsyncadd (!%p1447_p6), %s1075_s8, 4294966272  ;;  %s33_s22 = sadd.s32 1, %s1817_s22   ;;  %s2441_s17 = smov %s1801_s18 }
 0x378   : > { %p30_p10 = scmp.ge.s32.totalorder %s33_s22, 4   ;;  %s2442_s18 = smov %s1805_s19 }
 0x379   : > { %s2443_s19 = smov %s2066_s24  ;;  %s2444_s20 = smov %s1813_s21 }
 0x37a   : > { %s2445_s21 = smov %s2447_s30  ;;  %32 = sbr.rel (!%p30_p10) target bundleno = 16 (0x10), region = 154 }
 0x381   :  { %1089 = vsyncpa [#allocation3], 1 }
 0x382   :  { %1091 = vsyncpa [#allocation3 + $0x1], 1 }
 0x383   :  { %1092 = vsyncpa [#allocation6], 1 }
 0x384   :  { %1093 = vsyncpa [#allocation9], 1 }
 0x385   :  { %1094 = vsyncpa [#allocation4], 1 }
 0x386   :  { %1096 = vsyncpa [#allocation4 + $0x1], 1 }
 0x387   :  { %1097 = vsyncpa [#allocation12], 1 }
 0x388   :  { %1099 = vsyncpa [#allocation12 + $0x1], 1 }

// kernel: tpu_custom_call.1
= control target key start
LH: loop header
LB: loop body
LE: loop exit
PB: predicated region body
PF: predicated region fallthrough
CT: control target
= control target key end

     0   :  { %s2380_s0 = inlined_call_operand.hbm [shape: f32[2,16,128], index: 0, kind: input, shape index: {}]   ;;  %s2381_s1 = inlined_call_operand.vmem [shape: f32[1,128], index: 1, kind: input, shape index: {}]   ;;  %s2382_s2 = inlined_call_operand.vmem [shape: f32[1,128], index: 2, kind: input, shape index: {}]   ;;  %s2383_s3 = inlined_call_operand.hbm [shape: bf16[128,128], index: 3, kind: input, shape index: {}]   ;;  %s2384_s4 = inlined_call_operand.vmem [shape: f32[1,128], index: 4, kind: input, shape index: {}]   ;;  %s2385_s5 = inlined_call_operand.hbm [shape: bf16[128,128], index: 5, kind: input, shape index: {}]   ;;  %s2386_s6 = inlined_call_operand.vmem [shape: f32[1,128], index: 6, kind: input, shape index: {}]   ;;  %s2387_s7 = inlined_call_operand.hbm [shape: bf16[128,128], index: 7, kind: input, shape index: {}]   ;;  %s2388_s8 = inlined_call_operand.vmem [shape: f32[1,128], index: 8, kind: input, shape index: {}]   ;;  %s2389_s9 = inlined_call_operand.hbm [shape: bf16[2,4,16,32], index: 9, kind: output, shape index: {0}]   ;;  %s2390_s10 = inlined_call_operand.hbm [shape: bf16[2,4,16,32], index: 10, kind: output, shape index: {1}]   ;;  %s2391_s11 = inlined_call_operand.hbm [shape: bf16[2,4,16,32], index: 11, kind: output, shape index: {2}]  }
   0x1   :  { %2405 = sst [smem:[#allocation22_spill]] %s2380_s0 }
   0x2   :  { %2406 = sst [smem:[#allocation23_spill]] %s2388_s8 }
   0x3   :  { %2407 = sst [smem:[#allocation24_spill]] %s2389_s9 }
   0x4   :  { %2408 = sst [smem:[#allocation25_spill]] %s2390_s10 }
   0x5   :  { %2409 = sst [smem:[#allocation26_spill]] %s2391_s11 }
   0x6   :  { %17 = vsyncpa [#allocation3], 0 }
   0x7   :  { %19 = vsyncpa [#allocation3 + $0x1], 0 }
   0x8   :  { %20 = vsyncpa [#allocation6], 0 }
   0x9   :  { %21 = vsyncpa [#allocation9], 0 }
   0xa   :  { %22 = vsyncpa [#allocation4], 0 }
   0xb   :  { %24 = vsyncpa [#allocation4 + $0x1], 0 }
   0xc   :  { %25 = vsyncpa [#allocation12], 0 }
   0xd   :  { %27 = vsyncpa [#allocation12 + $0x1], 0  ;;  %s1896_s17 = smov 0   ;;  %s1898_s18 = smov 0  }
   0xe   :  { %s1900_s19 = smov 0   ;;  %s1902_s20 = smov 0  }
   0xf   :  { %s1904_s21 = smov 0   ;;  %s1906_s22 = smov 0  }
  0x10 LB: > { %2410 = sst [smem:[#allocation19_spill]] %s1797_s17  ;;  %s1927_s23 = sadd.s32 4294967295, %s1817_s22   ;;  %s1817_s22 = sphi %s1906_s22, %s33_s22   ;;  %s1813_s21 = sphi %s1904_s21, %s2445_s21   ;;  %s1809_s20 = sphi %s1902_s20, %s2444_s20   ;;  %s1805_s19 = sphi %s1900_s19, %s2443_s19   ;;  %s1801_s18 = sphi %s1898_s18, %s2442_s18   ;;  %s1797_s17 = sphi %s1896_s17, %s2441_s17  }
  0x11   : > { %2411 = sst [smem:[#allocation20_spill]] %s1809_s20  ;;  %s2392_s24 = sadd.s32 4294967294, %s1817_s22  }
  0x12   : > { %p67_p0 = scmp.ne.s32.totalorder %s1801_s18, %s1797_s17  ;;  %p2396_p1 = scmp.eq.s32.totalorder %s1927_s23, 0 }
  0x13   : > { %p267_p3 = scmp.eq.s32.totalorder %s2392_s24, 1  ;;  %p1235_p5 = scmp.ge.s32.totalorder %s1817_s22, 1 }
  0x14   : > { %p1938_p4 = por %p2396_p1, %p67_p0  ;;  %p330_p7 = scmp.lt.s32.totalorder %s1817_s22, 3 }
  0x15   : > { %p1943_p6 = por %p267_p3, %p67_p0  ;;  %s1819_s28 = smov [#allocation5]  }
  0x16   : > { %s2412_s25 = scalar_select %p1938_p4, 1, 0 }
  0x17   : > { %s2413_s26 = scalar_select %p1943_p6, 1, 0 }
  0x18   : > { %p1948_p8 = pnand %p1235_p5, %p330_p7  ;;  %s348_s29 = sshll.u32 %s1819_s28, 4  ;;  %s1952_s29 = int_to_ptr.vmem [resolvable:$true] %s348_s29 }
  0x19   : > { %2414 = sst [smem:[#allocation21_spill]] %s2413_s26  ;;  %s1820_s12 = smov [#allocation7]  }
  0x1a   : > { %s2415_s27 = scalar_select %p1948_p8, 1, 0 }
  0x1b   : > { %p1432_p9 = pneg %p1948_p8  ;;  %s364_s13 = sshll.u32 %s1820_s12, 4  ;;  %s1963_s13 = int_to_ptr.vmem [resolvable:$true] %s364_s13 }
  0x1c   : > { %s1821_s14 = smov [#allocation8]   ;;  %s1553_s24 = scalar_lea.hbm %s2383_s3, 1024 }
  0x1d   : > { %p1959_p11 = pnand %p1432_p9, %p2396_p1  ;;  %s1965_s15 = sshll.u32 %s1821_s14, 4  ;;  %s381_s15 = int_to_ptr.vmem [resolvable:$true] %s1965_s15 }
  0x1e   : > { %p1554_p12 = scmp.ne.s32.totalorder %s2383_s3, %s1553_s24  ;;  %p1560_p5 = scmp.lt.u32.totalorder %s1553_s24, %s2383_s3 }
  0x1f   : > { %p1975_p13 = pneg %p1959_p11 }
  0x21   : > { %p1556_p0 = pnand %p1975_p13, %p1554_p12 }
  0x23   : > { %p1557_p3 = pneg %p1556_p0 }
  0x25   : > { %p1562_p7 = pnand %p1560_p5, %p1557_p3 }
  0x27   : > { %1565 = shalt.err (!%p1562_p7)
}
  0x28   : > { %s1566_s17 = scalar_lea.vmem %s1952_s29, 1024  ;;  %p1574_p2 = scmp.lt.s32.totalorder %s1952_s29, %s1952_s29 }
  0x29   : > { %p1567_p9 = scmp.ne.s32.totalorder %s1952_s29, %s1566_s17  ;;  %p1575_p6 = scmp.lt.s32.totalorder %s1566_s17, %s1566_s17 }
  0x2b   : > { %p1569_p10 = pnand %p1567_p9, %p1975_p13  ;;  %p1576_p12 = por %p1575_p6, %p1574_p2 }
  0x2d   : > { %p1570_p1 = pneg %p1569_p10 }
  0x2f   : > { %p1577_p0 = pnand %p1576_p12, %p1570_p1 }
  0x31   : > { %1580 = shalt.err (!%p1577_p0)
}
  0x32   : > { %s1822_s26 = smov 64   ;;  %s1823_s24 = smov 4  }
  0x33   : > { %1435 = dma.hbm_to_vmem [thread:$0]  (!%p1959_p11), %s2383_s3, 1024, %s1952_s29, [#allocation6], %s1822_s26, %s1822_s26, %s1823_s24  }
  0x34   : > { %s1581_s17 = scalar_lea.hbm %s2385_s5, 1024 }
  0x35   : > { %p1582_p1 = scmp.ne.s32.totalorder %s2385_s5, %s1581_s17  ;;  %p1588_p10 = scmp.lt.u32.totalorder %s1581_s17, %s2385_s5 }
  0x37   : > { %p1584_p2 = pnand %p1582_p1, %p1975_p13 }
  0x39   : > { %p1585_p6 = pneg %p1584_p2 }
  0x3b   : > { %p1590_p3 = pnand %p1588_p10, %p1585_p6 }
  0x3d   : > { %1593 = shalt.err (!%p1590_p3)
}
  0x3e   : > { %s1594_s29 = scalar_lea.vmem %s1963_s13, 1024  ;;  %p1602_p12 = scmp.lt.s32.totalorder %s1963_s13, %s1963_s13 }
  0x3f   : > { %p1595_p5 = scmp.ne.s32.totalorder %s1963_s13, %s1594_s29  ;;  %p1603_p0 = scmp.lt.s32.totalorder %s1594_s29, %s1594_s29 }
  0x41   : > { %p1597_p7 = pnand %p1595_p5, %p1975_p13  ;;  %p1604_p1 = por %p1603_p0, %p1602_p12 }
  0x43   : > { %p1598_p9 = pneg %p1597_p7 }
  0x45   : > { %p1605_p2 = pnand %p1604_p1, %p1598_p9 }
  0x47   : > { %1608 = shalt.err (!%p1605_p2)
}
  0x48   : > { %1438 = dma.hbm_to_vmem [thread:$0]  (!%p1959_p11), %s2385_s5, 1024, %s1963_s13, [#allocation6], %s1822_s26, %s1822_s26, %s1823_s24  }
  0x49   : > { %s1609_s16 = scalar_lea.hbm %s2387_s7, 1024 }
  0x4a   : > { %p1610_p6 = scmp.ne.s32.totalorder %s2387_s7, %s1609_s16  ;;  %p1616_p5 = scmp.lt.u32.totalorder %s1609_s16, %s2387_s7 }
  0x4c   : > { %p1612_p10 = pnand %p1610_p6, %p1975_p13 }
  0x4e   : > { %p1613_p3 = pneg %p1612_p10 }
  0x50   : > { %p1618_p7 = pnand %p1616_p5, %p1613_p3 }
  0x52   : > { %1621 = shalt.err (!%p1618_p7)
}
  0x53   : > { %s1622_s29 = scalar_lea.vmem %s381_s15, 1024  ;;  %p1630_p1 = scmp.lt.s32.totalorder %s381_s15, %s381_s15 }
  0x54   : > { %p1623_p9 = scmp.ne.s32.totalorder %s381_s15, %s1622_s29  ;;  %p1631_p2 = scmp.lt.s32.totalorder %s1622_s29, %s1622_s29 }
  0x56   : > { %p1625_p12 = pnand %p1623_p9, %p1975_p13  ;;  %p1632_p4 = por %p1631_p2, %p1630_p1 }
  0x58   : > { %p1626_p0 = pneg %p1625_p12 }
  0x5a   : > { %p1633_p8 = pnand %p1632_p4, %p1626_p0 }
  0x5c   : > { %1636 = shalt.err (!%p1633_p8)
}
  0x5d   : > { %1441 = dma.hbm_to_vmem [thread:$0]  (!%p1959_p11), %s2387_s7, 1024, %s381_s15, [#allocation9], %s1822_s26, %s1822_s26, %s1823_s24  }
  0x5e   : > { %s54_s11 = sadd.s32 1, %s1805_s19  ;;  %s45_s30 = sadd.s32 1, %s1813_s21 }
  0x5f   : > { %p61_p4 = scmp.ne.s32.totalorder %s1805_s19, %s1801_s18  ;;  %p47_p8 = scmp.ge.s32.totalorder %s45_s30, 2 }
  0x60   : > { %p62_p13 = scmp.eq.s32.totalorder %s1817_s22, 0  ;;  %p2418_p6 = scmp.eq.s32.totalorder %s1927_s23, 1 }
  0x61   : > { %p1459_p3 = scmp.lt.s32.totalorder %s1817_s22, 2  ;;  %s2447_s30 = smov (%p47_p8, %s45_s30), 0 }
  0x62   : > { %p2054_p10 = por %p2418_p6, %p61_p4  ;;  %p63_p5 = por %p62_p13, %p61_p4 }
  0x63   : > { %s397_s10 = sand.u32 1, %s1805_s19   ;;  %s49_s20 = ssub.s32 %s1813_s21, %s2447_s30 }
  0x64   : > { %p52_p7 = scmp.eq.s32.totalorder %s49_s20, 0  ;;  %s1240_s15 = sshll.u32 %s397_s10, 4 }
  0x65   : > { %s1315_s26 = sshll.u32 %s1813_s21, 8  ;;  %s2420_s0 = sld [smem:[#allocation22_spill]] }
  0x66   : > { %s2066_s24 = scalar_select %p52_p7, %s1805_s19, %s54_s11  }
  0x67   : > { %s401_s14 = scalar_lea.vmem [#allocation2], %s1240_s15  ;;  %p2077_p11 = pnand %p1459_p3, %p63_p5 }
  0x68   : > { %s410_s17 = sshll.u32 %s401_s14, 4  ;;  %s2081_s13 = scalar_lea.sflag [#allocation3], %s397_s10  ;;  %s2073_s17 = int_to_ptr.vmem [resolvable:$true] %s410_s17 }
  0x69   : > { %p1639_p12 = pneg %p2077_p11 }
  0x6b   : > { %s2071_s12 = scalar_lea.hbm %s2420_s0, %s1315_s26  ;;  %s1642_s15 = scalar_lea.hbm %s2420_s0, 512 }
  0x6c   : > { %s1637_s8 = scalar_lea.hbm %s2071_s12, 256  ;;  %p1643_p2 = scmp.lt.u32.totalorder %s2071_s12, %s2420_s0 }
  0x6d   : > { %p1638_p9 = scmp.ne.s32.totalorder %s2071_s12, %s1637_s8  ;;  %p1644_p4 = scmp.lt.u32.totalorder %s1642_s15, %s1637_s8 }
  0x6e   : > { %p1646_p13 = scmp.lt.u32.totalorder %s1637_s8, %s2071_s12 }
  0x6f   : > { %p1640_p0 = pnand %p1639_p12, %p1638_p9  ;;  %p1645_p8 = por %p1644_p4, %p1643_p2 }
  0x71   : > { %p1641_p1 = pneg %p1640_p0  ;;  %p1647_p6 = por %p1646_p13, %p1645_p8 }
  0x73   : > { %p1648_p3 = pnand %p1647_p6, %p1641_p1 }
  0x75   : > { %1651 = shalt.err (!%p1648_p3)
}
  0x76   : > { %s1652_s10 = scalar_lea.vmem %s2073_s17, 256  ;;  %s1824_s28 = smov [#allocation2]  }
  0x77   : > { %p1653_p5 = scmp.ne.s32.totalorder %s2073_s17, %s1652_s10  ;;  %s1657_s14 = sshll.u32 %s1824_s28, 4  ;;  %s1658_s14 = int_to_ptr.vmem [resolvable:$false] %s1657_s14 }
  0x78   : > { %s1659_s11 = scalar_lea.vmem %s1658_s14, 512  ;;  %p1660_p0 = scmp.lt.s32.totalorder %s2073_s17, %s1658_s14 }
  0x79   : > { %p1655_p7 = pnand %p1653_p5, %p1639_p12  ;;  %p1661_p2 = scmp.lt.s32.totalorder %s1659_s11, %s1652_s10 }
  0x7b   : > { %p1656_p9 = pneg %p1655_p7  ;;  %p1662_p4 = por %p1661_p2, %p1660_p0 }
  0x7d   : > { %p1663_p8 = pnand %p1662_p4, %p1656_p9 }
  0x7f   : > { %1666 = shalt.err (!%p1663_p8)
}
  0x80   : > { %s1825_s8 = smov 128   ;;  %s1826_s20 = smov 8  }
  0x81   : > { %1445 = dma.hbm_to_vmem [thread:$0]  (!%p2077_p11), %s2071_s12, 256, %s2073_s17, %s2081_s13, %s1825_s8, %s1825_s8, %s1826_s20  }
  0x82   : > { %p2422_p12 = scmp.ne.s32.totalorder %s2415_s27, 0 }
  0x83   : > { %s2112_s15 = sand.u32 (!%p2422_p12), 1, %s1801_s18   ;;  %p2423_p1 = scmp.ne.s32.totalorder (!%p2422_p12), %s2412_s25, 0 }
  0x84   : > { %422 = sbr.rel (%p2422_p12) target bundleno = 872 (0x368), region = 56  ;;  %s1244_s26 = sshll.u32 (!%p2422_p12), %s2112_s15, 4 }
  0x85   : > { %s425_s16 = scalar_lea.sflag (!%p2422_p12), [#allocation3], %s2112_s15  ;;  %s428_s10 = scalar_lea.vmem (!%p2422_p12), [#allocation2], %s1244_s26 }
  0x8b   : > { %1776 = dma.done.wait (%p2423_p1), %s425_s16, 256  }
  0x8c   : > { %1778 = vsyncadd (%p2423_p1), %s425_s16, 4294967040  ;;  %p2424_p13 = scmp.eq.s32.totalorder %s1927_s23, 0 }
  0x8e   : > { %1780 = dma.done.wait (%p2424_p13), [#allocation6], 2048   ;;  %p2425_p11 = pmov %p2424_p13 }
  0x90   : > { %1782 = vsyncadd (%p2425_p11), [#allocation6], 4294965248  ;;  %p2426_p6 = pmov %p2425_p11 }
  0x92   : > { %1784 = dma.done.wait (%p2426_p6), [#allocation9], 1024   ;;  %p2427_p3 = pmov %p2426_p6 }
  0x93   : > { %v494_v0 = vld [vmem:[%s428_s10] sm:$0xff]  ;;  %v495_v1 = vld [vmem:[%s428_s10 + $0x8] sm:$0xff]  ;;  %v1827_v4 = vmov 0.0   ;;  %vm1828_vm0 = vmmov 0   ;;  %s2165_s29 = sshll.u32 %s2112_s15, 5  ;;  %vm886_vm1 = vcmask 257024  }
  0x94   : > { %1786 = vsyncadd (%p2427_p3), [#allocation9], 4294966272  ;;  %498 = vadd.xlane.f32.xlu0 %v494_v0  ;;  %v1525_v2 = vld [vmem:[#allocation5] sm:$0xff]   ;;  %1352 = vmatprep.subr.bf16.mxu0 %v1827_v4  ;;  %v1527_v5 = vld [vmem:[#allocation5 + $0x8] sm:$0xff]   ;;  %s2174_s8 = scalar_lea.vmem [#allocation11], %s2165_s29  ;;  %s2401_s20 = smov 64  }
  0x95   : > { %v1526_v3 = vld [vmem:[#allocation7] sm:$0xff]   ;;  %1372 = vmatprep.subr.bf16.mxu1 %v1827_v4  ;;  %1353 = vmatpush3.bf16.msra.mxu0 %v1525_v2  ;;  %v1528_v14 = vld [vmem:[#allocation7 + $0x8] sm:$0xff]   ;;  %v1529_v15 = vld [vmem:[#allocation5 + $0x10] sm:$0xff]   ;;  %s1830_s26 = smov 96   ;;  %s2181_s16 = scalar_lea.vmem [#allocation10], %s2165_s29 }
  0x96   : > { %1373 = vmatpush3.bf16.msra.mxu1 %v1526_v3  ;;  %1354 = vmatprep.subr.bf16.mxu0 %v1827_v4  ;;  %v1530_v16 = vld [vmem:[#allocation7 + $0x10] sm:$0xff]   ;;  %v1531_v17 = vld [vmem:[#allocation5 + $0x18] sm:$0xff]   ;;  %v1533_v19 = vld [vmem:[#allocation5 + $0x20] sm:$0xff]   ;;  %s1831_s10 = smov 32   ;;  %s2428_s12 = sld [smem:[#allocation23_spill]] }
  0x97   : > { %1374 = vmatprep.subr.bf16.mxu1 %v1827_v4  ;;  %v1532_v18 = vld [vmem:[#allocation7 + $0x18] sm:$0xff]   ;;  %v1534_v20 = vld [vmem:[#allocation7 + $0x20] sm:$0xff]   ;;  %1368 = vmatprep.mubr.msk.bf16.mxu0 %vm1828_vm0, %v1827_v4  ;;  %v1535_v21 = vld [vmem:[#allocation5 + $0x28] sm:$0xff]   ;;  %s2199_s17 = scalar_lea.vmem [#allocation13], %s2165_s29  ;;  %s2429_s13 = sld [smem:[#allocation20_spill]] }
  0x98   : > { %500 = vadd.xlane.f32.xlu0 %v495_v1  ;;  %1388 = vmatprep.mubr.msk.bf16.mxu1 %vm1828_vm0, %v1827_v4  ;;  %v1536_v22 = vld [vmem:[#allocation7 + $0x28] sm:$0xff]   ;;  %v1537_v23 = vld [vmem:[#allocation5 + $0x30] sm:$0xff]   ;;  %v1539_v25 = vld [vmem:[#allocation5 + $0x38] sm:$0xff]   ;;  %s993_s29 = sand.u32 1, %s1927_s23   ;;  %s1032_s14 = sshll.u32 %s2174_s8, 4  ;;  %s2232_s14 = int_to_ptr.vmem [resolvable:$true] %s1032_s14 }
  0x99   : > { %1355 = vmatpush3.bf16.msra.mxu0 %v1527_v5  ;;  %v1538_v24 = vld [vmem:[#allocation7 + $0x30] sm:$0xff]   ;;  %v1540_v26 = vld [vmem:[#allocation7 + $0x38] sm:$0xff]   ;;  %v1251_v35 = vld [vmem:[%s2381_s1] ss:$0 sm:$0xff]  ;;  %s2238_s23 = scalar_lea.sflag [#allocation12], %s993_s29  ;;  %s1667_s27 = scalar_lea.vmem %s2232_s14, 512 }
  0x9a   : > { %1356 = vmatprep.subr.bf16.mxu0 %v1827_v4  ;;  %1375 = vmatpush3.bf16.msra.mxu1 %v1528_v14  ;;  %v1252_v39 = vld [vmem:[%s2382_s2] ss:$0 sm:$0xff]  ;;  %v1542_v45 = vld [vmem:[#allocation8 + $0x8] sm:$0xff]   ;;  %v1543_v46 = vld [vmem:[#allocation8 + $0x10] sm:$0xff]   ;;  %p1668_p5 = scmp.ne.s32.totalorder %s2232_s14, %s1667_s27 }
  0x9b   : > { %1376 = vmatprep.subr.bf16.mxu1 %v1827_v4  ;;  %v1541_v43 = vld [vmem:[#allocation8] sm:$0xff]   ;;  %v1544_v47 = vld [vmem:[#allocation8 + $0x18] sm:$0xff]   ;;  %v1546_v49 = vld [vmem:[#allocation8 + $0x28] sm:$0xff]  }
  0x9c   : > { %v1545_v48 = vld [vmem:[#allocation8 + $0x20] sm:$0xff]   ;;  %v1547_v50 = vld [vmem:[#allocation8 + $0x30] sm:$0xff]   ;;  %v1548_v51 = vld [vmem:[#allocation8 + $0x38] sm:$0xff]   ;;  %p1669_p7 = pnand %p1668_p5, %p2054_p10 }
  0x9d   : > { %1357 = vmatpush3.bf16.msra.mxu0 %v1529_v15  ;;  %v1253_v52 = vld [vmem:[%s2384_s4] ss:$0 sm:$0xff]  ;;  %s2219_s28 = sshll.u32 %s2429_s13, 9 }
  0x9e   : > { %1377 = vmatpush3.bf16.msra.mxu1 %v1530_v16  ;;  %1358 = vmatprep.subr.bf16.mxu0 %v1827_v4  ;;  %v1262_v53 = vld [vmem:[%s2386_s6] ss:$0 sm:$0xff]  ;;  %p1670_p9 = pneg %p1669_p7 }
  0x9f   : > { %1378 = vmatprep.subr.bf16.mxu1 %v1827_v4 }
  0xa1   : > { %1359 = vmatpush3.bf16.msra.mxu0 %v1531_v17 }
  0xa2   : > { %1379 = vmatpush3.bf16.msra.mxu1 %v1532_v18  ;;  %1360 = vmatprep.subr.bf16.mxu0 %v1827_v4 }
  0xa3   : > { %1380 = vmatprep.subr.bf16.mxu1 %v1827_v4 }
  0xa5   : > { %1361 = vmatpush3.bf16.msra.mxu0 %v1533_v19 }
  0xa6   : > { %1381 = vmatpush3.bf16.msra.mxu1 %v1534_v20  ;;  %1362 = vmatprep.subr.bf16.mxu0 %v1827_v4 }
  0xa7   : > { %1382 = vmatprep.subr.bf16.mxu1 %v1827_v4 }
  0xa9   : > { %1363 = vmatpush3.bf16.msra.mxu0 %v1535_v21 }
  0xaa   : > { %1383 = vmatpush3.bf16.msra.mxu1 %v1536_v22  ;;  %1364 = vmatprep.subr.bf16.mxu0 %v1827_v4 }
  0xab   : > { %1384 = vmatprep.subr.bf16.mxu1 %v1827_v4 }
  0xad   : > { %1365 = vmatpush3.bf16.msra.mxu0 %v1537_v23 }
  0xae   : > { %1385 = vmatpush3.bf16.msra.mxu1 %v1538_v24  ;;  %1366 = vmatprep.subr.bf16.mxu0 %v1827_v4 }
  0xaf   : > { %1386 = vmatprep.subr.bf16.mxu1 %v1827_v4 }
  0xb1   : > { %1367 = vmatpush3.bf16.msra.mxu0 %v1539_v25 }
  0xb2   : > { %1387 = vmatpush3.bf16.msra.mxu1 %v1540_v26  ;;  %1392 = vmatprep.subr.bf16.mxu0 %v1827_v4 }
 0x121   : > { %v499_v6 = vpop.xlane.xlu0 %498 }
 0x122   : > { %v503_v7 = vmul.f32 0.0078125, %v499_v6 }
 0x124   : > { %v505_v8 = vsub.f32 %v494_v0, %v503_v7 }
 0x125   : > { %v501_v9 = vpop.xlane.xlu0 %500 }
 0x126   : > { %v504_v10 = vmul.f32 0.0078125, %v501_v9  ;;  %v507_v11 = vmul.f32 %v505_v8, %v505_v8 }
 0x128   : > { %v506_v12 = vsub.f32 %v495_v1, %v504_v10  ;;  %509 = vadd.xlane.f32.xlu1 %v507_v11 }
 0x12a   : > { %v508_v13 = vmul.f32 %v506_v12, %v506_v12 }
 0x12c   : > { %511 = vadd.xlane.f32.xlu1 %v508_v13 }
 0x1b5   : > { %v510_v27 = vpop.xlane.xlu1 %509 }
 0x1b6   : > { %v513_v28 = vmul.f32 0.0078125, %v510_v27 }
 0x1b8   : > { %v515_v29 = vadd.f32 1e-05, %v513_v28 }
 0x1b9   : > { %v512_v30 = vpop.xlane.xlu1 %511 }
 0x1ba   : > { %1549 = vrsqrt.f32 %v515_v29  ;;  %v514_v31 = vmul.f32 0.0078125, %v512_v30 }
 0x1bc   : > { %v516_v32 = vadd.f32 1e-05, %v514_v31 }
 0x1be   : > { %1551 = vrsqrt.f32 %v516_v32 }
 0x1c4   : > { %v1550_v33 = vpop.eup %1549 }
 0x1c5   : > { %v519_v34 = vmul.f32 %v1550_v33, %v505_v8  ;;  %v1271_v8 = vld [vmem:[%s2428_s12] ss:$0 sm:$0xff]  ;;  %s1832_s12 = smov [#allocation11]  }
 0x1c6   : > { %s1671_s13 = sshll.u32 %s1832_s12, 4  ;;  %s1672_s13 = int_to_ptr.vmem [resolvable:$false] %s1671_s13 }
 0x1c7   : > { %v527_v38 = vmul.f32 %v1251_v35, %v519_v34  ;;  %s1673_s11 = scalar_lea.vmem %s1672_s13, 1024  ;;  %p1674_p0 = scmp.lt.s32.totalorder %s2232_s14, %s1672_s13 }
 0x1c8   : > { %v1552_v36 = vpop.eup %1551  ;;  %p1675_p2 = scmp.lt.s32.totalorder %s1673_s11, %s1667_s27 }
 0x1c9   : > { %v520_v37 = vmul.f32 %v1552_v36, %v506_v12  ;;  %v535_v41 = vadd.f32 %v1252_v39, %v527_v38 }
 0x1ca   : > { %p1676_p4 = por %p1675_p2, %p1674_p0 }
 0x1cb   : > { %v528_v40 = vmul.f32 %v1251_v35, %v520_v37 }
 0x1cc   : > { %p1677_p8 = pnand %p1676_p4, %p1670_p9 }
 0x1cd   : > { %v536_v42 = vadd.f32 %v1252_v39, %v528_v40 }
 0x1cf   : > { %v537_v44 = vpack.c.bf16 %v536_v42, %v535_v41 }
 0x1d1   : > { %1369 = vmatmul.mubr.bf16.vlgmr.msra.gmra.mrb[0].mxu0 %v537_v44  ;;  %1389 = vmatmul.mubr.bf16.vlgmr.msra.gmra.mrb[0].mxu1 %v537_v44 }
 0x1d2   : > { %1393 = vmatpush3.bf16.msra.mxu0 %v1541_v43  ;;  %1408 = vmatprep.mubr.msk.bf16.mxu0 %vm1828_vm0, %v1827_v4 }
 0x1d3   : > { %1394 = vmatprep.subr.bf16.mxu0 %v1827_v4 }
 0x1d6   : > { %1395 = vmatpush3.bf16.msra.mxu0 %v1542_v45 }
 0x1d7   : > { %1396 = vmatprep.subr.bf16.mxu0 %v1827_v4 }
 0x1da   : > { %1397 = vmatpush3.bf16.msra.mxu0 %v1543_v46 }
 0x1db   : > { %1398 = vmatprep.subr.bf16.mxu0 %v1827_v4 }
 0x1de   : > { %1399 = vmatpush3.bf16.msra.mxu0 %v1544_v47 }
 0x1df   : > { %1400 = vmatprep.subr.bf16.mxu0 %v1827_v4 }
 0x1e2   : > { %1401 = vmatpush3.bf16.msra.mxu0 %v1545_v48 }
 0x1e3   : > { %1402 = vmatprep.subr.bf16.mxu0 %v1827_v4 }
 0x1e6   : > { %1403 = vmatpush3.bf16.msra.mxu0 %v1546_v49 }
 0x1e7   : > { %1404 = vmatprep.subr.bf16.mxu0 %v1827_v4 }
 0x1ea   : > { %1405 = vmatpush3.bf16.msra.mxu0 %v1547_v50 }
 0x1eb   : > { %1406 = vmatprep.subr.bf16.mxu0 %v1827_v4 }
 0x1ee   : > { %1407 = vmatpush3.bf16.msra.mxu0 %v1548_v51 }
 0x1f1   : > { %1409 = vmatmul.mubr.bf16.vlgmr.msra.gmra.mrb[4].mxu0 %v537_v44 }
 0x2a4   : > { %v643_v54 = vpop.f32.mrb[0].mxu0  ;;  %v757_v55 = vpop.f32.mrb[0].mxu1 }
 0x2a5   : > { %v644_v56 = vadd.f32 %v1253_v52, %v643_v54  ;;  %v758_v57 = vadd.f32 %v1262_v53, %v757_v55  ;;  %v1370_v58 = vpop.f32.mrb[1].mxu0  ;;  %v1390_v59 = vpop.f32.mrb[1].mxu1 }
 0x2a6   : > { %v646_v60 = vpop.f32.mrb[2].mxu0  ;;  %v760_v61 = vpop.f32.mrb[2].mxu1 }
 0x2a7   : > { %v650_v62 = vmul.f32 0.17677669, %v644_v56  ;;  %v1318_v63 = vpack.c.bf16 %v758_v57, %v758_v57  ;;  %v647_v0 = vadd.f32 %v1253_v52, %v646_v60  ;;  %v761_v1 = vadd.f32 %v1262_v53, %v760_v61  ;;  %v1371_v2 = vpop.f32.mrb[3].mxu0  ;;  %v1391_v3 = vpop.f32.mrb[3].mxu1 }
 0x2a9   : > { %v1316_v4 = vpack.c.bf16 %v650_v62, %v650_v62  ;;  %896 = vst.msk [vmem:[%s2174_s8] sm:$0xf] %vm886_vm1, %v1318_v63  ;;  %v651_v5 = vmul.f32 0.17677669, %v647_v0  ;;  %v1319_v6 = vpack.c.bf16 %v761_v1, %v761_v1  ;;  %943 = vrot.lane.b32.xlu1 %v1318_v63, %s2401_s20  ;;  %916 = vrot.lane.b32.xlu0 %v1318_v63, %s1830_s26 }
 0x2ab   : > { %887 = vst.msk [vmem:[%s2181_s16] sm:$0xf] %vm886_vm1, %v1316_v4  ;;  %v1317_v7 = vpack.c.bf16 %v651_v5, %v651_v5  ;;  %897 = vst.msk [vmem:[%s2174_s8 + $0x4] sm:$0xf] %vm886_vm1, %v1319_v6 }
 0x2ad   : > { %888 = vst.msk [vmem:[%s2181_s16 + $0x4] sm:$0xf] %vm886_vm1, %v1317_v7  ;;  %970 = vrot.lane.b32.xlu0 %v1318_v63, %s1831_s10  ;;  %918 = vrot.lane.b32.xlu1 %v1319_v6, %s1830_s26 }
 0x2b1   : > { %945 = vrot.lane.b32.xlu1 %v1319_v6, %s2401_s20  ;;  %907 = vrot.lane.b32.xlu0 %v1316_v4, %s1830_s26 }
 0x2b5   : > { %972 = vrot.lane.b32.xlu1 %v1319_v6, %s1831_s10  ;;  %934 = vrot.lane.b32.xlu0 %v1316_v4, %s2401_s20 }
 0x2b9   : > { %961 = vrot.lane.b32.xlu0 %v1316_v4, %s1831_s10  ;;  %909 = vrot.lane.b32.xlu1 %v1317_v7, %s1830_s26 }
 0x2bd   : > { %936 = vrot.lane.b32.xlu1 %v1317_v7, %s2401_s20 }
 0x2c1   : > { %963 = vrot.lane.b32.xlu1 %v1317_v7, %s1831_s10 }
 0x2c4   : > { %v869_v9 = vpop.f32.mrb[4].mxu0 }
 0x2c5   : > { %v870_v10 = vadd.f32 %v1271_v8, %v869_v9  ;;  %v1410_v11 = vpop.f32.mrb[5].mxu0 }
 0x2c6   : > { %v872_v12 = vpop.f32.mrb[6].mxu0 }
 0x2c7   : > { %v1320_v13 = vpack.c.bf16 %v870_v10, %v870_v10  ;;  %v873_v14 = vadd.f32 %v1271_v8, %v872_v12  ;;  %v1411_v15 = vpop.f32.mrb[7].mxu0 }
 0x2c9   : > { %905 = vst.msk [vmem:[%s2199_s17] sm:$0xf] %vm886_vm1, %v1320_v13  ;;  %v1321_v16 = vpack.c.bf16 %v873_v14, %v873_v14  ;;  %925 = vrot.lane.b32.xlu0 %v1320_v13, %s1830_s26 }
 0x2cb   : > { %906 = vst.msk [vmem:[%s2199_s17 + $0x4] sm:$0xf] %vm886_vm1, %v1321_v16  ;;  %927 = vrot.lane.b32.xlu1 %v1321_v16, %s1830_s26 }
 0x2cd   : > { %952 = vrot.lane.b32.xlu0 %v1320_v13, %s2401_s20 }
 0x2cf   : > { %954 = vrot.lane.b32.xlu1 %v1321_v16, %s2401_s20 }
 0x2d1   : > { %979 = vrot.lane.b32.xlu0 %v1320_v13, %s1831_s10 }
 0x2d3   : > { %981 = vrot.lane.b32.xlu1 %v1321_v16, %s1831_s10  ;;  %s2430_s10 = sld [smem:[#allocation25_spill]] }
 0x2d9   : > { %s2230_s25 = scalar_lea.hbm %s2430_s10, %s2219_s28 }
 0x31b   : > { %v944_v17 = vpop.permute.xlu1 %943  ;;  %v917_v18 = vpop.permute.xlu0 %916 }
 0x31c   : > { %1294 = vst.msk [vmem:[%s2174_s8 + $0x10] sm:$0xf] %vm886_vm1, %v944_v17  ;;  %1288 = vst.msk [vmem:[%s2174_s8 + $0x8] sm:$0xf] %vm886_vm1, %v917_v18 }
 0x31f   : > { %v971_v19 = vpop.permute.xlu0 %970  ;;  %v919_v20 = vpop.permute.xlu1 %918 }
 0x320   : > { %1300 = vst.msk [vmem:[%s2174_s8 + $0x18] sm:$0xf] %vm886_vm1, %v971_v19  ;;  %1289 = vst.msk [vmem:[%s2174_s8 + $0xc] sm:$0xf] %vm886_vm1, %v919_v20 }
 0x323   : > { %v946_v21 = vpop.permute.xlu1 %945  ;;  %v908_v22 = vpop.permute.xlu0 %907 }
 0x324   : > { %1295 = vst.msk [vmem:[%s2174_s8 + $0x14] sm:$0xf] %vm886_vm1, %v946_v21  ;;  %1286 = vst.msk [vmem:[%s2181_s16 + $0x8] sm:$0xf] %vm886_vm1, %v908_v22 }
 0x327   : > { %v973_v23 = vpop.permute.xlu1 %972  ;;  %v935_v24 = vpop.permute.xlu0 %934 }
 0x328   : > { %1301 = vst.msk [vmem:[%s2174_s8 + $0x1c] sm:$0xf] %vm886_vm1, %v973_v23  ;;  %1292 = vst.msk [vmem:[%s2181_s16 + $0x10] sm:$0xf] %vm886_vm1, %v935_v24 }
 0x329   : > { %1680 = shalt.err (!%p1677_p8)
}
 0x32a   : > { %s1681_s8 = scalar_lea.hbm %s2230_s25, 512  ;;  %s1685_s12 = scalar_lea.hbm %s2430_s10, 1024 }
 0x32b   : > { %p1682_p12 = scmp.ne.s32.totalorder %s2230_s25, %s1681_s8  ;;  %p1686_p11 = scmp.lt.u32.totalorder %s2230_s25, %s2430_s10 }
 0x32c   : > { %p1687_p6 = scmp.lt.u32.totalorder %s1685_s12, %s1681_s8  ;;  %p1689_p5 = scmp.lt.u32.totalorder %s1681_s8, %s2230_s25 }
 0x32d   : > { %p1683_p1 = pnand %p1682_p12, %p2054_p10 }
 0x32e   : > { %p1688_p3 = por %p1687_p6, %p1686_p11 }
 0x32f   : > { %p1684_p13 = pneg %p1683_p1 }
 0x330   : > { %p1690_p7 = por %p1689_p5, %p1688_p3 }
 0x332   : > { %p1691_p9 = pnand %p1690_p7, %p1684_p13 }
 0x334   : > { %1694 = shalt.err (!%p1691_p9)
}
 0x335   : > { %s2403_s27 = smov 4   ;;  %s2431_s11 = smov 64   ;;  %v962_v25 = vpop.permute.xlu0 %961  ;;  %v910_v26 = vpop.permute.xlu1 %909 }
 0x336   : > { %1427 = dma.vmem_to_hbm [thread:$0]  (%p2054_p10), %s2232_s14, 512, %s2230_s25, %s2238_s23, %s2431_s11, %s2431_s11, %s2403_s27  }
 0x337   : > { %1298 = vst.msk [vmem:[%s2181_s16 + $0x18] sm:$0xf] %vm886_vm1, %v962_v25  ;;  %1287 = vst.msk [vmem:[%s2181_s16 + $0xc] sm:$0xf] %vm886_vm1, %v910_v26  ;;  %s1014_s20 = sshll.u32 %s2181_s16, 4  ;;  %s2432_s26 = sld [smem:[#allocation24_spill]]  ;;  %s2278_s20 = int_to_ptr.vmem [resolvable:$true] %s1014_s20 }
 0x338   : > { %s1695_s25 = scalar_lea.vmem %s2278_s20, 512  ;;  %s1834_s13 = smov [#allocation10]  }
 0x339   : > { %v937_v27 = vpop.permute.xlu1 %936  ;;  %p1696_p0 = scmp.ne.s32.totalorder %s2278_s20, %s1695_s25  ;;  %s1699_s27 = sshll.u32 %s1834_s13, 4  ;;  %s1700_s27 = int_to_ptr.vmem [resolvable:$false] %s1699_s27 }
 0x33a   : > { %1293 = vst.msk [vmem:[%s2181_s16 + $0x14] sm:$0xf] %vm886_vm1, %v937_v27  ;;  %s1701_s8 = scalar_lea.vmem %s1700_s27, 1024  ;;  %p1702_p8 = scmp.lt.s32.totalorder %s2278_s20, %s1700_s27 }
 0x33b   : > { %p1697_p2 = pnand %p1696_p0, %p2054_p10  ;;  %p1703_p12 = scmp.lt.s32.totalorder %s1701_s8, %s1695_s25 }
 0x33d   : > { %s2276_s12 = scalar_lea.hbm %s2432_s26, %s2219_s28  ;;  %v964_v28 = vpop.permute.xlu1 %963  ;;  %p1698_p4 = pneg %p1697_p2 }
 0x33e   : > { %1299 = vst.msk [vmem:[%s2181_s16 + $0x1c] sm:$0xf] %vm886_vm1, %v964_v28  ;;  %p1704_p1 = por %p1703_p12, %p1702_p8 }
 0x340   : > { %p1705_p13 = pnand %p1704_p1, %p1698_p4 }
 0x342   : > { %1708 = shalt.err (!%p1705_p13)
}
 0x343   : > { %s1709_s16 = scalar_lea.hbm %s2276_s12, 512  ;;  %s1713_s13 = scalar_lea.hbm %s2432_s26, 1024 }
 0x344   : > { %p1710_p11 = scmp.ne.s32.totalorder %s2276_s12, %s1709_s16  ;;  %p1714_p5 = scmp.lt.u32.totalorder %s2276_s12, %s2432_s26 }
 0x345   : > { %p1715_p7 = scmp.lt.u32.totalorder %s1713_s13, %s1709_s16  ;;  %p1717_p0 = scmp.lt.u32.totalorder %s1709_s16, %s2276_s12 }
 0x346   : > { %p1711_p6 = pnand %p1710_p11, %p2054_p10 }
 0x347   : > { %p1716_p9 = por %p1715_p7, %p1714_p5 }
 0x348   : > { %p1712_p3 = pneg %p1711_p6 }
 0x349   : > { %p1718_p2 = por %p1717_p0, %p1716_p9 }
 0x34b   : > { %p1719_p4 = pnand %p1718_p2, %p1712_p3 }
 0x34d   : > { %1722 = shalt.err (!%p1719_p4)
}
 0x34e   : > { %s2433_s25 = smov 4   ;;  %s2434_s8 = scalar_lea.sflag [#allocation4], %s2112_s15  ;;  %v926_v29 = vpop.permute.xlu0 %925  ;;  %v928_v30 = vpop.permute.xlu1 %927 }
 0x34f   : > { %1426 = dma.vmem_to_hbm [thread:$0]  (%p2054_p10), %s2278_s20, 512, %s2276_s12, %s2434_s8, %s2431_s11, %s2431_s11, %s2433_s25  }
 0x350   : > { %1290 = vst.msk [vmem:[%s2199_s17 + $0x8] sm:$0xf] %vm886_vm1, %v926_v29  ;;  %1291 = vst.msk [vmem:[%s2199_s17 + $0xc] sm:$0xf] %vm886_vm1, %v928_v30  ;;  %s1050_s0 = sshll.u32 %s2199_s17, 4  ;;  %s2435_s12 = sld [smem:[#allocation26_spill]]  ;;  %s2318_s0 = int_to_ptr.vmem [resolvable:$true] %s1050_s0 }
 0x351   : > { %s1723_s16 = scalar_lea.vmem %s2318_s0, 512  ;;  %s1835_s29 = smov [#allocation13]  }
 0x352   : > { %v953_v31 = vpop.permute.xlu0 %952  ;;  %v955_v32 = vpop.permute.xlu1 %954  ;;  %p1724_p8 = scmp.ne.s32.totalorder %s2318_s0, %s1723_s16  ;;  %s1727_s13 = sshll.u32 %s1835_s29, 4  ;;  %s1728_s13 = int_to_ptr.vmem [resolvable:$false] %s1727_s13 }
 0x353   : > { %1296 = vst.msk [vmem:[%s2199_s17 + $0x10] sm:$0xf] %vm886_vm1, %v953_v31  ;;  %1297 = vst.msk [vmem:[%s2199_s17 + $0x14] sm:$0xf] %vm886_vm1, %v955_v32  ;;  %s1729_s27 = scalar_lea.vmem %s1728_s13, 1024  ;;  %p1730_p13 = scmp.lt.s32.totalorder %s2318_s0, %s1728_s13 }
 0x354   : > { %p1725_p12 = pnand %p1724_p8, %p2054_p10  ;;  %p1731_p11 = scmp.lt.s32.totalorder %s1729_s27, %s1723_s16 }
 0x356   : > { %v980_v33 = vpop.permute.xlu0 %979  ;;  %s2326_s14 = scalar_lea.hbm %s2435_s12, %s2219_s28  ;;  %v982_v34 = vpop.permute.xlu1 %981  ;;  %p1726_p1 = pneg %p1725_p12 }
 0x357   : > { %1302 = vst.msk [vmem:[%s2199_s17 + $0x18] sm:$0xf] %vm886_vm1, %v980_v33  ;;  %1303 = vst.msk [vmem:[%s2199_s17 + $0x1c] sm:$0xf] %vm886_vm1, %v982_v34  ;;  %p1732_p6 = por %p1731_p11, %p1730_p13 }
 0x359   : > { %p1733_p3 = pnand %p1732_p6, %p1726_p1 }
 0x35b   : > { %1736 = shalt.err (!%p1733_p3)
}
 0x35c   : > { %s1737_s17 = scalar_lea.hbm %s2326_s14, 512  ;;  %s1741_s15 = scalar_lea.hbm %s2435_s12, 1024 }
 0x35d   : > { %p1738_p5 = scmp.ne.s32.totalorder %s2326_s14, %s1737_s17  ;;  %p1742_p0 = scmp.lt.u32.totalorder %s2326_s14, %s2435_s12 }
 0x35e   : > { %p1743_p2 = scmp.lt.u32.totalorder %s1741_s15, %s1737_s17  ;;  %p1745_p8 = scmp.lt.u32.totalorder %s1737_s17, %s2326_s14 }
 0x35f   : > { %p1739_p7 = pnand %p1738_p5, %p2054_p10 }
 0x360   : > { %p1744_p4 = por %p1743_p2, %p1742_p0 }
 0x361   : > { %p1740_p9 = pneg %p1739_p7 }
 0x362   : > { %p1746_p12 = por %p1745_p8, %p1744_p4 }
 0x364   : > { %p1747_p1 = pnand %p1746_p12, %p1740_p9 }
 0x366   : > { %1750 = shalt.err (!%p1747_p1)
}
 0x367   : > { %1428 = dma.vmem_to_hbm [thread:$0]  (%p2054_p10), %s2318_s0, 512, %s2326_s14, %s2238_s23, %s2431_s11, %s2431_s11, %s2433_s25  }
 0x368 PF: > { %s2436_s16 = sld [smem:[#allocation19_spill]]  ;;  %s2437_s13 = sld [smem:[#allocation21_spill]] }
 0x369   : > { %p2439_p11 = scmp.ge.s32.totalorder %s1817_s22, 2 }
 0x36e   : > { %s1065_s27 = sand.u32 1, %s2436_s16   ;;  %p2438_p13 = scmp.ne.s32.totalorder %s2437_s13, 0 }
 0x36f   : > { %s1066_s17 = scalar_lea.sflag [#allocation4], %s1065_s27 }
 0x370   : > { %p1447_p6 = pnand %p2439_p11, %p2438_p13 }
 0x372   : > { %1788 = dma.done.wait (!%p1447_p6), %s1066_s17, 512  }
 0x373   : > { %1790 = vsyncadd (!%p1447_p6), %s1066_s17, 4294966784  ;;  %s2440_s9 = sadd.s32 4294967294, %s1817_s22  }
 0x374   : > { %s1074_s28 = sand.u32 1, %s2440_s9  }
 0x375   : > { %s1075_s8 = scalar_lea.sflag [#allocation12], %s1074_s28 }
 0x376   : > { %1792 = dma.done.wait (!%p1447_p6), %s1075_s8, 1024  }
 0x377   : > { %1794 = vsyncadd (!%p1447_p6), %s1075_s8, 4294966272  ;;  %s33_s22 = sadd.s32 1, %s1817_s22   ;;  %s2441_s17 = smov %s1801_s18 }
 0x378   : > { %p30_p10 = scmp.ge.s32.totalorder %s33_s22, 4   ;;  %s2442_s18 = smov %s1805_s19 }
 0x379   : > { %s2443_s19 = smov %s2066_s24  ;;  %s2444_s20 = smov %s1813_s21 }
 0x37a   : > { %s2445_s21 = smov %s2447_s30  ;;  %32 = sbr.rel (!%p30_p10) target bundleno = 16 (0x10), region = 154 }
 0x381   :  { %1089 = vsyncpa [#allocation3], 1 }
 0x382   :  { %1091 = vsyncpa [#allocation3 + $0x1], 1 }
 0x383   :  { %1092 = vsyncpa [#allocation6], 1 }
 0x384   :  { %1093 = vsyncpa [#allocation9], 1 }
 0x385   :  { %1094 = vsyncpa [#allocation4], 1 }
 0x386   :  { %1096 = vsyncpa [#allocation4 + $0x1], 1 }
 0x387   :  { %1097 = vsyncpa [#allocation12], 1 }
 0x388   :  { %1099 = vsyncpa [#allocation12 + $0x1], 1 }

</bundles_post_ra>
